<compile_context>
chip_gen: v6e
topology: v6e:2x2x1
jax: 0.10.0
libtpu: 0.0.40
codegen_flags: <defaults>
</compile_context>

<pallas_src>
import jax
import jax.numpy as jnp
from jax.experimental import pallas as pl
from jax.experimental.pallas import tpu as pltpu

# Static geometry implied by the PyTorch forward pass.
_B = 2                      # batch size baked into the row layouts
_C, _H, _W = 12, 10, 28     # conv branch: x.reshape(B, 12, 10, 28)
_L = 5                      # TCN runs on the last 5 time steps
_LPAD = 8                   # padded t rows per batch block (8-aligned slices/rolls)
_WPAD = 32                  # padded w rows per batch block (rows 28..31 stay zero)
_TCN_CH = [120, 90, 60, 30, 10]
_KPAD = 128                 # lane padding for every channel-like dimension

_TROWS = _B * _LPAD         # 16
_CROWS = _B * _WPAD         # 64

# bf16 content-weight slab: row offsets (all multiples of 128 -> aligned slices)
_W1_OFF = [i * 640 for i in range(4)]          # [256,128] (tap t-d ; tap t) stacked
_W2_OFF = [i * 640 + 256 for i in range(4)]    # [256,128]
_WD_OFF = [i * 640 + 512 for i in range(4)]    # [128,128] 1x1 downsample
_WW1_OFF = 2560                                # [384,128] conv1+bn1 (dw=0,1,2 stacked)
_WW2_OFF = 2944                                # [384,128] conv2+bn2
_WC_OFF = 3328                                 # [128,128] Conv2d(12,12,(10,1))
_ECA_OFF = 3456                                # [128,128] (h-pool @ eca conv1d) / (H*W)
_CHT_OFF = 3584                                # [128,128] channel attn -> (c*10+h) cols
_WROWS = 3712

# f32 row-vector slab: row offsets
_W3A_OFF = 0        # 16 rows: fc3[:, :50] folded onto the (b,t) TCN output layout
_HVM_OFF = 16       # 64 rows: fc1 + fc3[:, 50:] folded onto the (b,w) conv layout
_B1_OFF = 80        # 4 rows (TCN conv1 biases)
_B2_OFF = 84        # 4 rows (TCN conv2 biases)
_BD_OFF = 88        # 4 rows (TCN downsample biases)
_CB1_OFF = 92       # conv1+bn1 folded bias
_CB2_OFF = 93       # conv2+bn2 folded bias
_VROWS = 96


# ---------------------------------------------------------------------------
# The single fused kernel
# ---------------------------------------------------------------------------
def _fused_kernel(x_ref, w_ref, v_ref, s_ref, out_ref):
    f32, bf16 = jnp.float32, jnp.bfloat16

    def mxu(a_bf16, off, rows):     # content matmul: bf16 operands, f32 accumulate
        return jnp.dot(a_bf16, w_ref[off:off + rows, :], preferred_element_type=f32)

    # --------------------- in-kernel input relayout ----------------------
    # x_flat rows = (b, w), cols = original 120-dim channel (== ci*10 + h).
    xr = x_ref[...]                                                  # [B*28, 120]
    xr = jnp.concatenate([xr, jnp.zeros((_B * _W, _KPAD - 120), f32)], axis=1)
    zw = jnp.zeros((_WPAD - _W, _KPAD), f32)
    zt = jnp.zeros((_LPAD - _L, _KPAD), f32)
    cpieces, tpieces = [], []
    for b in range(_B):
        cpieces += [xr[b * _W:(b + 1) * _W], zw]                     # pad w to 32/block
        tpieces += [xr[(b + 1) * _W - _L:(b + 1) * _W], zt]          # last 5 steps, pad to 8
    x_conv = jnp.concatenate(cpieces, axis=0)                        # [64,128] rows=(b,w)
    x_tcn = jnp.concatenate(tpieces, axis=0)                         # [16,128] rows=(b,t)

    # -------------------------------- TCN --------------------------------
    t_pos = jax.lax.broadcasted_iota(jnp.int32, (_TROWS, 1), 0) % _LPAD
    h = x_tcn
    for i in range(4):
        d = 2 ** i
        hb = h.astype(bf16)                                          # cast hoisted (2 uses)
        if d < _LPAD:
            h_sh = jnp.where(t_pos >= d, pltpu.roll(h, d, 0), 0.0)   # causal shift, exact
            a = mxu(jnp.concatenate([h_sh.astype(bf16), hb], axis=1), _W1_OFF[i], 256)
        else:   # dilation 8 > 5 real steps: the shifted tap is always zero-padding
            a = mxu(hb, _W1_OFF[i] + _KPAD, _KPAD)
        a = jnp.maximum(a + v_ref[_B1_OFF + i:_B1_OFF + i + 1, :], 0.0)   # conv1->chomp->relu
        ab = a.astype(bf16)
        if d < _LPAD:
            a_sh = jnp.where(t_pos >= d, pltpu.roll(a, d, 0), 0.0)
            c = mxu(jnp.concatenate([a_sh.astype(bf16), ab], axis=1), _W2_OFF[i], 256)
        else:
            c = mxu(ab, _W2_OFF[i] + _KPAD, _KPAD)
        c = jnp.maximum(c + v_ref[_B2_OFF + i:_B2_OFF + i + 1, :], 0.0)   # conv2->chomp->relu
        res = mxu(hb, _WD_OFF[i], _KPAD) + v_ref[_BD_OFF + i:_BD_OFF + i + 1, :]
        h = jnp.maximum(c + res, 0.0)                                # block output (>= 0)
        # TODO(synk): dropout inside the TCN block is identity at inference.

    # out1 = relu(tcn_out.reshape(B,50)) is already >= 0; fc3[:, :50] folded (exact f32).
    prod1 = h * v_ref[_W3A_OFF:_W3A_OFF + _TROWS, :]                 # [16,128]

    # ---------------------------- conv branch -----------------------------
    w_pos = jax.lax.broadcasted_iota(jnp.int32, (_CROWS, 1), 0) % _WPAD
    w_valid = w_pos < _W                                             # real-w rows

    def conv3x3(inp, woff, boff):
        # taps in[w-1] | in[w] | in[w+1]; the conv zero-padding comes for free
        # because the w-pad rows of `inp` are kept at zero (the circular roll
        # wraps into a zero pad row at every batch-block edge).
        left = pltpu.roll(inp, 1, 0)
        right = pltpu.roll(inp, _CROWS - 1, 0)
        cat = jnp.concatenate([left, inp, right], axis=1).astype(bf16)     # [64,384]
        out = mxu(cat, woff, 3 * _KPAD) + v_ref[boff:boff + 1, :]
        return jnp.where(w_valid, out, 0.0)                          # re-zero pad rows

    o = jnp.maximum(conv3x3(x_conv, _WW1_OFF, _CB1_OFF), 0.0)        # conv1+bn1+relu
    o = conv3x3(o, _WW2_OFF, _CB2_OFF)                               # conv2+bn2

    # ECA:  attn = sigmoid(conv1d_k3(gap(o)));   ca(o)*o == o*o*attn
    gap = jnp.concatenate(
        [jnp.sum(o[b * _WPAD:(b + 1) * _WPAD], axis=0, keepdims=True)
         for b in range(_B)], axis=0)                                # [B,128] exact f32
    attn = jax.nn.sigmoid(mxu(gap.astype(bf16), _ECA_OFF, _KPAD))    # [B,128]
    attn_cols = mxu(attn.astype(bf16), _CHT_OFF, _KPAD)              # [B,128]
    attn_full = jnp.concatenate(
        [jnp.broadcast_to(attn_cols[b:b + 1, :], (_WPAD, _KPAD))
         for b in range(_B)], axis=0)                                # sublane broadcast
    scaled = o * o * attn_full

    # Conv2d(12,12,(10,1),bias=False); fc1 + fc3[:,50:] collapsed weighting (exact f32).
    outc = mxu(scaled.astype(bf16), _WC_OFF, _KPAD)                  # [64,128]
    prod2 = outc * v_ref[_HVM_OFF:_HVM_OFF + _CROWS, :]

    # -------------------------------- head --------------------------------
    # final = relu(fc3(cat([out1, out2])))   (dropout is identity at eval)
    b_pos = jax.lax.broadcasted_iota(jnp.int32, (_B, 1), 0)
    acc = jnp.zeros((_B, 1), f32)
    for b in range(_B):
        cb = (jnp.sum(prod1[b * _LPAD:(b + 1) * _LPAD]) +
              jnp.sum(prod2[b * _WPAD:(b + 1) * _WPAD]))
        acc = acc + jnp.where(b_pos == b, cb, 0.0)
    out_ref[...] = jnp.maximum(acc + s_ref[0], 0.0)


_VMEM = pl.BlockSpec(memory_space=pltpu.MemorySpace.VMEM)
_SMEM = pl.BlockSpec(memory_space=pltpu.MemorySpace.SMEM)


def my_block_forward(x, kp):
    """x: [B, 120, 28] float32 -> [B, 1] float32 (B must equal the baked-in _B)."""
    B = x.shape[0]
    assert B == _B, "kernel row layout is built for batch=_B"

    # Only remaining XLA glue: one transpose+reshape of the raw input.
    # TODO(synk): this copy could also move in-kernel (jnp.transpose /
    # pltpu.einshape) once the minor-dim transpose is validated on the target.
    x_flat = jnp.transpose(x, (0, 2, 1)).reshape(B * _W, 120)

    flops = 9_437_184 + 12_582_912 + 2_097_152 + 131_072            # MXU matmuls
    bytes_accessed = (x_flat.size * 4 + kp["wts"].size * 2 +
                      kp["vec"].size * 4 + 4 + B * 4)
    cost = pl.CostEstimate(flops=flops, transcendentals=_B * _KPAD,
                           bytes_accessed=bytes_accessed)

    # No grid: the whole working set is ~1 MiB of VMEM, so a single invocation
    # avoids per-step pipeline overhead and keeps every intermediate on-chip.
    # TODO(synk): for larger batches add a leading "parallel" batch grid axis so
    # v7x's two TensorCores each take half the batch.
    return pl.pallas_call(
        _fused_kernel,
        out_shape=jax.ShapeDtypeStruct((B, 1), jnp.float32),
        in_specs=[_VMEM, _VMEM, _VMEM, _SMEM],
        out_specs=_VMEM,
        cost_estimate=cost,
    )(x_flat, kp["wts"], kp["vec"], kp["scal"])


# ---------------------------------------------------------------------------
# Parameters: raw (PyTorch-layout) init + host-side packing / folding
# ---------------------------------------------------------------------------
def init_params(key):
    keys = iter(jax.random.split(key, 64))

    def nrm(shape, scale=0.1):
        return scale * jax.random.normal(next(keys), shape, dtype=jnp.float32)

    def uni(shape, lo=0.5, hi=1.5):
        return jax.random.uniform(next(keys), shape, jnp.float32, lo, hi)

    p = {}
    tcn = []
    for i in range(4):
        cin, cout = _TCN_CH[i], _TCN_CH[i + 1]
        # TODO(synk): weight_norm is assumed pre-materialized into effective weights.
        tcn.append(dict(
            w1=nrm((cout, cin, 2)), b1=nrm((cout,)),
            w2=nrm((cout, cout, 2)), b2=nrm((cout,)),
            wd=nrm((cout, cin, 1)), bd=nrm((cout,)),
        ))
    p["tcn"] = tcn
    p["conv1_w"] = nrm((_C, _C, 3, 3))
    p["bn1"] = (uni((_C,)), nrm((_C,)), nrm((_C,)), uni((_C,)))   # gamma,beta,mean,var
    p["conv2_w"] = nrm((_C, _C, 3, 3))
    p["bn2"] = (uni((_C,)), nrm((_C,)), nrm((_C,)), uni((_C,)))
    p["eca_w"] = nrm((3,), scale=0.5)            # eca_layer Conv1d(1,1,3) weight
    p["conv_w"] = nrm((_C, _C, _H, 1))           # Conv2d(12,12,(10,1), bias=False)
    p["fc1_w"] = nrm((50, 336)); p["fc1_b"] = nrm((50,))
    p["fc3_w"] = nrm((1, 100));  p["fc3_b"] = nrm((1,))
    return p


def _pad2(m, rows=_KPAD, cols=_KPAD):
    r, c = m.shape
    return jnp.pad(m, ((0, rows - r), (0, cols - c)))


def _fold_bn(w, bn, eps=1e-5):
    gamma, beta, mean, var = bn
    s = gamma / jnp.sqrt(var + eps)
    return w * s[:, None, None, None], beta - mean * s


def _conv3x3_col_mats(w_eff):
    """3x3 conv (pad=1) as 3 per-`dw` matrices on the (ci*10 + h) column layout."""
    mats = []
    for dw in range(3):
        m = jnp.zeros((_C * _H, _C * _H), jnp.float32)
        for dh in range(3):
            a = w_eff[:, :, dh, dw].T                               # [ci, co]
            band = jnp.eye(_H, k=1 - dh, dtype=jnp.float32)         # [h_in, h_out]
            m = m + jnp.einsum("ab,ij->aibj", a, band).reshape(_C * _H, _C * _H)
        mats.append(_pad2(m))
    return mats


def pack_params(p, batch=_B):
    """Fold BN / fc1 / fc3, stack K-concatenated weights, build the 3 slabs."""
    assert batch == _B

    chunks = []
    for blk in p["tcn"]:
        w1s = jnp.concatenate([_pad2(blk["w1"][:, :, 0].T),
                               _pad2(blk["w1"][:, :, 1].T)], axis=0)   # [256,128]
        w2s = jnp.concatenate([_pad2(blk["w2"][:, :, 0].T),
                               _pad2(blk["w2"][:, :, 1].T)], axis=0)
        wd = _pad2(blk["wd"][:, :, 0].T)                               # [128,128]
        chunks += [w1s, w2s, wd]

    w1e, bias1 = _fold_bn(p["conv1_w"], p["bn1"])
    w2e, bias2 = _fold_bn(p["conv2_w"], p["bn2"])
    chunks.append(jnp.concatenate(_conv3x3_col_mats(w1e), axis=0))     # [384,128]
    chunks.append(jnp.concatenate(_conv3x3_col_mats(w2e), axis=0))

    wc = jnp.transpose(p["conv_w"][:, :, :, 0], (1, 2, 0)).reshape(_C * _H, _C)
    chunks.append(_pad2(wc))                                           # [128,128]

    # eca_layer(12): conv1d(1,1,3,pad=1,bias=False) over channels == tri-diagonal;
    # fold the h-pool and the 1/(H*W) into the same matrix.
    we = p["eca_w"]; idx = jnp.arange(_C)
    t = jnp.zeros((_C, _C), jnp.float32)
    t = t.at[idx, idx].set(we[1])
    t = t.at[idx[:-1], idx[1:]].set(we[0])
    t = t.at[idx[1:], idx[:-1]].set(we[2])
    ch_sum = jnp.kron(jnp.eye(_C, dtype=jnp.float32), jnp.ones((_H, 1), jnp.float32))
    chunks.append(_pad2(ch_sum @ t / float(_H * _W)))                  # [128,128]
    ch_t = jnp.kron(jnp.eye(_C, dtype=jnp.float32), jnp.ones((1, _H), jnp.float32))
    chunks.append(_pad2(ch_t))                                         # [128,128]

    wts = jnp.concatenate(chunks, axis=0).astype(jnp.bfloat16)
    assert wts.shape == (_WROWS, _KPAD)

    vec = jnp.zeros((_VROWS, _KPAD), jnp.float32)
    # fc3[:, :50] folded onto the TCN output layout: rows (b,t) padded to 8/block.
    w3a = p["fc3_w"][0, :50].reshape(10, _L).T                         # [t, c]
    for b in range(_B):
        vec = vec.at[_W3A_OFF + b * _LPAD:_W3A_OFF + b * _LPAD + _L, :10].set(w3a)
    # fc1 and fc3[:, 50:] collapse into one per-(w, co) weighting (exact algebra).
    w3b = p["fc3_w"][0, 50:]
    hv = (p["fc1_w"].T @ w3b).reshape(_C, _W).T                        # [w, co]
    for b in range(_B):
        vec = vec.at[_HVM_OFF + b * _WPAD:_HVM_OFF + b * _WPAD + _W, :_C].set(hv)
    for i, blk in enumerate(p["tcn"]):
        co = _TCN_CH[i + 1]
        vec = vec.at[_B1_OFF + i, :co].set(blk["b1"])
        vec = vec.at[_B2_OFF + i, :co].set(blk["b2"])
        vec = vec.at[_BD_OFF + i, :co].set(blk["bd"])
    vec = vec.at[_CB1_OFF, :_C * _H].set(jnp.repeat(bias1, _H))
    vec = vec.at[_CB2_OFF, :_C * _H].set(jnp.repeat(bias2, _H))

    scal = jnp.array([p["fc3_b"][0] + jnp.dot(w3b, p["fc1_b"])], dtype=jnp.float32)
    return {"wts": wts, "vec": vec, "scal": scal}


# ---------------------------------------------------------------------------
if __name__ == "__main__":
    key = jax.random.PRNGKey(0)
    pkey, xkey = jax.random.split(key)
    raw_params = init_params(pkey)
    packed = pack_params(raw_params, batch=_B)
    x = jax.random.normal(xkey, (_B, 120, 28), dtype=jnp.float32)

    fwd = jax.jit(my_block_forward)
    out = jax.block_until_ready(fwd(x, packed))

    assert out.shape == (_B, 1), out.shape
    assert out.dtype == jnp.float32
    assert bool(jnp.all(jnp.isfinite(out)))
    print("KERNEL_OK")
</pallas_src>

<mosaic_0001>
module attributes {stable_mosaic.version = 11 : i64} {
  func.func @_fused_kernel(%arg0: memref<56x120xf32, #tpu.memory_space<vmem>>, %arg1: memref<3712x128xbf16, #tpu.memory_space<vmem>>, %arg2: memref<96x128xf32, #tpu.memory_space<vmem>>, %arg3: memref<1xf32, #tpu.memory_space<smem>>, %arg4: memref<2x1xf32, #tpu.memory_space<vmem>>) attributes {dimension_semantics = [], scalar_prefetch = 0 : i64, scratch_operands = 0 : i64, tpu.core_type = #tpu.core_type<tc>} {
    %c0 = arith.constant 0 : index
    %c0_0 = arith.constant 0 : index
    %0 = vector.load %arg0[%c0, %c0_0] : memref<56x120xf32, #tpu.memory_space<vmem>>, vector<56x120xf32>
    %cst = arith.constant 0.000000e+00 : f32
    %1 = vector.broadcast %cst : f32 to vector<56x8xf32>
    %2 = tpu.concatenate %0, %1 in 1 : vector<56x120xf32>, vector<56x8xf32> -> vector<56x128xf32>
    %cst_1 = arith.constant 0.000000e+00 : f32
    %3 = vector.broadcast %cst_1 : f32 to vector<4x128xf32>
    %cst_2 = arith.constant 0.000000e+00 : f32
    %4 = vector.broadcast %cst_2 : f32 to vector<3x128xf32>
    %5 = vector.extract_strided_slice %2 {offsets = [0, 0], sizes = [28, 128], strides = [1, 1]} : vector<56x128xf32> to vector<28x128xf32>
    %6 = vector.extract_strided_slice %2 {offsets = [23, 0], sizes = [5, 128], strides = [1, 1]} : vector<56x128xf32> to vector<5x128xf32>
    %7 = vector.extract_strided_slice %2 {offsets = [28, 0], sizes = [28, 128], strides = [1, 1]} : vector<56x128xf32> to vector<28x128xf32>
    %8 = vector.extract_strided_slice %2 {offsets = [51, 0], sizes = [5, 128], strides = [1, 1]} : vector<56x128xf32> to vector<5x128xf32>
    %9 = tpu.concatenate %5, %3, %7, %3 in 0 : vector<28x128xf32>, vector<4x128xf32>, vector<28x128xf32>, vector<4x128xf32> -> vector<64x128xf32>
    %10 = tpu.concatenate %6, %4, %8, %4 in 0 : vector<5x128xf32>, vector<3x128xf32>, vector<5x128xf32>, vector<3x128xf32> -> vector<16x128xf32>
    %11 = tpu.iota {dimensions = array<i32: 0>} : vector<16x1xi32>
    %c8_i32 = arith.constant 8 : i32
    %c0_i32 = arith.constant 0 : i32
    %12 = arith.cmpi eq, %c8_i32, %c0_i32 : i32
    %c1_i32 = arith.constant 1 : i32
    %13 = arith.select %12, %c1_i32, %c8_i32 : i32
    %14 = vector.broadcast %13 : i32 to vector<16x1xi32>
    %15 = arith.remsi %11, %14 : vector<16x1xi32>
    %c0_i32_3 = arith.constant 0 : i32
    %16 = vector.broadcast %c0_i32_3 : i32 to vector<16x1xi32>
    %17 = arith.cmpi ne, %15, %16 : vector<16x1xi32>
    %c0_i32_4 = arith.constant 0 : i32
    %18 = vector.broadcast %c0_i32_4 : i32 to vector<16x1xi32>
    %19 = arith.cmpi slt, %15, %18 : vector<16x1xi32>
    %c0_i32_5 = arith.constant 0 : i32
    %20 = arith.cmpi slt, %13, %c0_i32_5 : i32
    %21 = vector.broadcast %20 : i1 to vector<16x1xi1>
    %22 = vector.broadcast %21 : vector<16x1xi1> to vector<16x1xi1>
    %23 = arith.xori %19, %22 : vector<16x1xi1>
    %24 = arith.andi %23, %17 : vector<16x1xi1>
    %25 = vector.broadcast %13 : i32 to vector<16x1xi32>
    %26 = arith.addi %15, %25 : vector<16x1xi32>
    %27 = arith.select %24, %26, %15 : vector<16x1xi1>, vector<16x1xi32>
    %28 = arith.truncf %10 : vector<16x128xf32> to vector<16x128xbf16>
    %c1_i32_6 = arith.constant 1 : i32
    %29 = vector.broadcast %c1_i32_6 : i32 to vector<16x1xi32>
    %30 = arith.cmpi sge, %27, %29 : vector<16x1xi32>
    %c1_i32_7 = arith.constant 1 : i32
    %31 = tpu.dynamic_rotate %10 by %c1_i32_7 dim 0 : vector<16x128xf32>, i32 -> vector<16x128xf32>
    %cst_8 = arith.constant 0.000000e+00 : f32
    %32 = vector.shape_cast %30 : vector<16x1xi1> to vector<16x1xi1>
    %33 = vector.broadcast %32 : vector<16x1xi1> to vector<16x128xi1>
    %34 = vector.broadcast %cst_8 : f32 to vector<16x128xf32>
    %35 = arith.select %33, %31, %34 : vector<16x128xi1>, vector<16x128xf32>
    %36 = arith.truncf %35 : vector<16x128xf32> to vector<16x128xbf16>
    %37 = tpu.concatenate %36, %28 in 1 : vector<16x128xbf16>, vector<16x128xbf16> -> vector<16x256xbf16>
    %c0_9 = arith.constant 0 : index
    %c0_10 = arith.constant 0 : index
    %38 = vector.load %arg1[%c0_9, %c0_10] : memref<3712x128xbf16, #tpu.memory_space<vmem>>, vector<256x128xbf16>
    %cst_11 = arith.constant dense<0.000000e+00> : vector<16x128xf32>
    %39 = tpu.matmul %37, %38, %cst_11 {dimension_numbers = #tpu.dot_dimension_numbers<[1], [0], [0], [1], [0, 0, 1, 1], [], []>} : vector<16x256xbf16>, vector<256x128xbf16>, vector<16x128xf32> -> vector<16x128xf32>
    %c80 = arith.constant 80 : index
    %c0_12 = arith.constant 0 : index
    %40 = vector.load %arg2[%c80, %c0_12] : memref<96x128xf32, #tpu.memory_space<vmem>>, vector<1x128xf32>
    %41 = vector.broadcast %40 : vector<1x128xf32> to vector<16x128xf32>
    %42 = arith.addf %39, %41 : vector<16x128xf32>
    %cst_13 = arith.constant 0.000000e+00 : f32
    %43 = vector.broadcast %cst_13 : f32 to vector<16x128xf32>
    %44 = arith.maximumf %42, %43 : vector<16x128xf32>
    %45 = arith.truncf %44 : vector<16x128xf32> to vector<16x128xbf16>
    %c1_i32_14 = arith.constant 1 : i32
    %46 = vector.broadcast %c1_i32_14 : i32 to vector<16x1xi32>
    %47 = arith.cmpi sge, %27, %46 : vector<16x1xi32>
    %c1_i32_15 = arith.constant 1 : i32
    %48 = tpu.dynamic_rotate %44 by %c1_i32_15 dim 0 : vector<16x128xf32>, i32 -> vector<16x128xf32>
    %cst_16 = arith.constant 0.000000e+00 : f32
    %49 = vector.shape_cast %47 : vector<16x1xi1> to vector<16x1xi1>
    %50 = vector.broadcast %49 : vector<16x1xi1> to vector<16x128xi1>
    %51 = vector.broadcast %cst_16 : f32 to vector<16x128xf32>
    %52 = arith.select %50, %48, %51 : vector<16x128xi1>, vector<16x128xf32>
    %53 = arith.truncf %52 : vector<16x128xf32> to vector<16x128xbf16>
    %54 = tpu.concatenate %53, %45 in 1 : vector<16x128xbf16>, vector<16x128xbf16> -> vector<16x256xbf16>
    %c256 = arith.constant 256 : index
    %c0_17 = arith.constant 0 : index
    %55 = vector.load %arg1[%c256, %c0_17] : memref<3712x128xbf16, #tpu.memory_space<vmem>>, vector<256x128xbf16>
    %cst_18 = arith.constant dense<0.000000e+00> : vector<16x128xf32>
    %56 = tpu.matmul %54, %55, %cst_18 {dimension_numbers = #tpu.dot_dimension_numbers<[1], [0], [0], [1], [0, 0, 1, 1], [], []>} : vector<16x256xbf16>, vector<256x128xbf16>, vector<16x128xf32> -> vector<16x128xf32>
    %c84 = arith.constant 84 : index
    %c0_19 = arith.constant 0 : index
    %57 = vector.load %arg2[%c84, %c0_19] : memref<96x128xf32, #tpu.memory_space<vmem>>, vector<1x128xf32>
    %58 = vector.broadcast %57 : vector<1x128xf32> to vector<16x128xf32>
    %59 = arith.addf %56, %58 : vector<16x128xf32>
    %cst_20 = arith.constant 0.000000e+00 : f32
    %60 = vector.broadcast %cst_20 : f32 to vector<16x128xf32>
    %61 = arith.maximumf %59, %60 : vector<16x128xf32>
    %c512 = arith.constant 512 : index
    %c0_21 = arith.constant 0 : index
    %62 = vector.load %arg1[%c512, %c0_21] : memref<3712x128xbf16, #tpu.memory_space<vmem>>, vector<128x128xbf16>
    %cst_22 = arith.constant dense<0.000000e+00> : vector<16x128xf32>
    %63 = tpu.matmul %28, %62, %cst_22 {dimension_numbers = #tpu.dot_dimension_numbers<[1], [0], [0], [1], [0, 0, 1, 1], [], []>} : vector<16x128xbf16>, vector<128x128xbf16>, vector<16x128xf32> -> vector<16x128xf32>
    %c88 = arith.constant 88 : index
    %c0_23 = arith.constant 0 : index
    %64 = vector.load %arg2[%c88, %c0_23] : memref<96x128xf32, #tpu.memory_space<vmem>>, vector<1x128xf32>
    %65 = vector.broadcast %64 : vector<1x128xf32> to vector<16x128xf32>
    %66 = arith.addf %63, %65 : vector<16x128xf32>
    %67 = arith.addf %61, %66 : vector<16x128xf32>
    %cst_24 = arith.constant 0.000000e+00 : f32
    %68 = vector.broadcast %cst_24 : f32 to vector<16x128xf32>
    %69 = arith.maximumf %67, %68 : vector<16x128xf32>
    %70 = arith.truncf %69 : vector<16x128xf32> to vector<16x128xbf16>
    %c2_i32 = arith.constant 2 : i32
    %71 = vector.broadcast %c2_i32 : i32 to vector<16x1xi32>
    %72 = arith.cmpi sge, %27, %71 : vector<16x1xi32>
    %c2_i32_25 = arith.constant 2 : i32
    %73 = tpu.dynamic_rotate %69 by %c2_i32_25 dim 0 : vector<16x128xf32>, i32 -> vector<16x128xf32>
    %cst_26 = arith.constant 0.000000e+00 : f32
    %74 = vector.shape_cast %72 : vector<16x1xi1> to vector<16x1xi1>
    %75 = vector.broadcast %74 : vector<16x1xi1> to vector<16x128xi1>
    %76 = vector.broadcast %cst_26 : f32 to vector<16x128xf32>
    %77 = arith.select %75, %73, %76 : vector<16x128xi1>, vector<16x128xf32>
    %78 = arith.truncf %77 : vector<16x128xf32> to vector<16x128xbf16>
    %79 = tpu.concatenate %78, %70 in 1 : vector<16x128xbf16>, vector<16x128xbf16> -> vector<16x256xbf16>
    %c640 = arith.constant 640 : index
    %c0_27 = arith.constant 0 : index
    %80 = vector.load %arg1[%c640, %c0_27] : memref<3712x128xbf16, #tpu.memory_space<vmem>>, vector<256x128xbf16>
    %cst_28 = arith.constant dense<0.000000e+00> : vector<16x128xf32>
    %81 = tpu.matmul %79, %80, %cst_28 {dimension_numbers = #tpu.dot_dimension_numbers<[1], [0], [0], [1], [0, 0, 1, 1], [], []>} : vector<16x256xbf16>, vector<256x128xbf16>, vector<16x128xf32> -> vector<16x128xf32>
    %c81 = arith.constant 81 : index
    %c0_29 = arith.constant 0 : index
    %82 = vector.load %arg2[%c81, %c0_29] : memref<96x128xf32, #tpu.memory_space<vmem>>, vector<1x128xf32>
    %83 = vector.broadcast %82 : vector<1x128xf32> to vector<16x128xf32>
    %84 = arith.addf %81, %83 : vector<16x128xf32>
    %cst_30 = arith.constant 0.000000e+00 : f32
    %85 = vector.broadcast %cst_30 : f32 to vector<16x128xf32>
    %86 = arith.maximumf %84, %85 : vector<16x128xf32>
    %87 = arith.truncf %86 : vector<16x128xf32> to vector<16x128xbf16>
    %c2_i32_31 = arith.constant 2 : i32
    %88 = vector.broadcast %c2_i32_31 : i32 to vector<16x1xi32>
    %89 = arith.cmpi sge, %27, %88 : vector<16x1xi32>
    %c2_i32_32 = arith.constant 2 : i32
    %90 = tpu.dynamic_rotate %86 by %c2_i32_32 dim 0 : vector<16x128xf32>, i32 -> vector<16x128xf32>
    %cst_33 = arith.constant 0.000000e+00 : f32
    %91 = vector.shape_cast %89 : vector<16x1xi1> to vector<16x1xi1>
    %92 = vector.broadcast %91 : vector<16x1xi1> to vector<16x128xi1>
    %93 = vector.broadcast %cst_33 : f32 to vector<16x128xf32>
    %94 = arith.select %92, %90, %93 : vector<16x128xi1>, vector<16x128xf32>
    %95 = arith.truncf %94 : vector<16x128xf32> to vector<16x128xbf16>
    %96 = tpu.concatenate %95, %87 in 1 : vector<16x128xbf16>, vector<16x128xbf16> -> vector<16x256xbf16>
    %c896 = arith.constant 896 : index
    %c0_34 = arith.constant 0 : index
    %97 = vector.load %arg1[%c896, %c0_34] : memref<3712x128xbf16, #tpu.memory_space<vmem>>, vector<256x128xbf16>
    %cst_35 = arith.constant dense<0.000000e+00> : vector<16x128xf32>
    %98 = tpu.matmul %96, %97, %cst_35 {dimension_numbers = #tpu.dot_dimension_numbers<[1], [0], [0], [1], [0, 0, 1, 1], [], []>} : vector<16x256xbf16>, vector<256x128xbf16>, vector<16x128xf32> -> vector<16x128xf32>
    %c85 = arith.constant 85 : index
    %c0_36 = arith.constant 0 : index
    %99 = vector.load %arg2[%c85, %c0_36] : memref<96x128xf32, #tpu.memory_space<vmem>>, vector<1x128xf32>
    %100 = vector.broadcast %99 : vector<1x128xf32> to vector<16x128xf32>
    %101 = arith.addf %98, %100 : vector<16x128xf32>
    %cst_37 = arith.constant 0.000000e+00 : f32
    %102 = vector.broadcast %cst_37 : f32 to vector<16x128xf32>
    %103 = arith.maximumf %101, %102 : vector<16x128xf32>
    %c1152 = arith.constant 1152 : index
    %c0_38 = arith.constant 0 : index
    %104 = vector.load %arg1[%c1152, %c0_38] : memref<3712x128xbf16, #tpu.memory_space<vmem>>, vector<128x128xbf16>
    %cst_39 = arith.constant dense<0.000000e+00> : vector<16x128xf32>
    %105 = tpu.matmul %70, %104, %cst_39 {dimension_numbers = #tpu.dot_dimension_numbers<[1], [0], [0], [1], [0, 0, 1, 1], [], []>} : vector<16x128xbf16>, vector<128x128xbf16>, vector<16x128xf32> -> vector<16x128xf32>
    %c89 = arith.constant 89 : index
    %c0_40 = arith.constant 0 : index
    %106 = vector.load %arg2[%c89, %c0_40] : memref<96x128xf32, #tpu.memory_space<vmem>>, vector<1x128xf32>
    %107 = vector.broadcast %106 : vector<1x128xf32> to vector<16x128xf32>
    %108 = arith.addf %105, %107 : vector<16x128xf32>
    %109 = arith.addf %103, %108 : vector<16x128xf32>
    %cst_41 = arith.constant 0.000000e+00 : f32
    %110 = vector.broadcast %cst_41 : f32 to vector<16x128xf32>
    %111 = arith.maximumf %109, %110 : vector<16x128xf32>
    %112 = arith.truncf %111 : vector<16x128xf32> to vector<16x128xbf16>
    %c4_i32 = arith.constant 4 : i32
    %113 = vector.broadcast %c4_i32 : i32 to vector<16x1xi32>
    %114 = arith.cmpi sge, %27, %113 : vector<16x1xi32>
    %c4_i32_42 = arith.constant 4 : i32
    %115 = tpu.dynamic_rotate %111 by %c4_i32_42 dim 0 : vector<16x128xf32>, i32 -> vector<16x128xf32>
    %cst_43 = arith.constant 0.000000e+00 : f32
    %116 = vector.shape_cast %114 : vector<16x1xi1> to vector<16x1xi1>
    %117 = vector.broadcast %116 : vector<16x1xi1> to vector<16x128xi1>
    %118 = vector.broadcast %cst_43 : f32 to vector<16x128xf32>
    %119 = arith.select %117, %115, %118 : vector<16x128xi1>, vector<16x128xf32>
    %120 = arith.truncf %119 : vector<16x128xf32> to vector<16x128xbf16>
    %121 = tpu.concatenate %120, %112 in 1 : vector<16x128xbf16>, vector<16x128xbf16> -> vector<16x256xbf16>
    %c1280 = arith.constant 1280 : index
    %c0_44 = arith.constant 0 : index
    %122 = vector.load %arg1[%c1280, %c0_44] : memref<3712x128xbf16, #tpu.memory_space<vmem>>, vector<256x128xbf16>
    %cst_45 = arith.constant dense<0.000000e+00> : vector<16x128xf32>
    %123 = tpu.matmul %121, %122, %cst_45 {dimension_numbers = #tpu.dot_dimension_numbers<[1], [0], [0], [1], [0, 0, 1, 1], [], []>} : vector<16x256xbf16>, vector<256x128xbf16>, vector<16x128xf32> -> vector<16x128xf32>
    %c82 = arith.constant 82 : index
    %c0_46 = arith.constant 0 : index
    %124 = vector.load %arg2[%c82, %c0_46] : memref<96x128xf32, #tpu.memory_space<vmem>>, vector<1x128xf32>
    %125 = vector.broadcast %124 : vector<1x128xf32> to vector<16x128xf32>
    %126 = arith.addf %123, %125 : vector<16x128xf32>
    %cst_47 = arith.constant 0.000000e+00 : f32
    %127 = vector.broadcast %cst_47 : f32 to vector<16x128xf32>
    %128 = arith.maximumf %126, %127 : vector<16x128xf32>
    %129 = arith.truncf %128 : vector<16x128xf32> to vector<16x128xbf16>
    %c4_i32_48 = arith.constant 4 : i32
    %130 = vector.broadcast %c4_i32_48 : i32 to vector<16x1xi32>
    %131 = arith.cmpi sge, %27, %130 : vector<16x1xi32>
    %c4_i32_49 = arith.constant 4 : i32
    %132 = tpu.dynamic_rotate %128 by %c4_i32_49 dim 0 : vector<16x128xf32>, i32 -> vector<16x128xf32>
    %cst_50 = arith.constant 0.000000e+00 : f32
    %133 = vector.shape_cast %131 : vector<16x1xi1> to vector<16x1xi1>
    %134 = vector.broadcast %133 : vector<16x1xi1> to vector<16x128xi1>
    %135 = vector.broadcast %cst_50 : f32 to vector<16x128xf32>
    %136 = arith.select %134, %132, %135 : vector<16x128xi1>, vector<16x128xf32>
    %137 = arith.truncf %136 : vector<16x128xf32> to vector<16x128xbf16>
    %138 = tpu.concatenate %137, %129 in 1 : vector<16x128xbf16>, vector<16x128xbf16> -> vector<16x256xbf16>
    %c1536 = arith.constant 1536 : index
    %c0_51 = arith.constant 0 : index
    %139 = vector.load %arg1[%c1536, %c0_51] : memref<3712x128xbf16, #tpu.memory_space<vmem>>, vector<256x128xbf16>
    %cst_52 = arith.constant dense<0.000000e+00> : vector<16x128xf32>
    %140 = tpu.matmul %138, %139, %cst_52 {dimension_numbers = #tpu.dot_dimension_numbers<[1], [0], [0], [1], [0, 0, 1, 1], [], []>} : vector<16x256xbf16>, vector<256x128xbf16>, vector<16x128xf32> -> vector<16x128xf32>
    %c86 = arith.constant 86 : index
    %c0_53 = arith.constant 0 : index
    %141 = vector.load %arg2[%c86, %c0_53] : memref<96x128xf32, #tpu.memory_space<vmem>>, vector<1x128xf32>
    %142 = vector.broadcast %141 : vector<1x128xf32> to vector<16x128xf32>
    %143 = arith.addf %140, %142 : vector<16x128xf32>
    %cst_54 = arith.constant 0.000000e+00 : f32
    %144 = vector.broadcast %cst_54 : f32 to vector<16x128xf32>
    %145 = arith.maximumf %143, %144 : vector<16x128xf32>
    %c1792 = arith.constant 1792 : index
    %c0_55 = arith.constant 0 : index
    %146 = vector.load %arg1[%c1792, %c0_55] : memref<3712x128xbf16, #tpu.memory_space<vmem>>, vector<128x128xbf16>
    %cst_56 = arith.constant dense<0.000000e+00> : vector<16x128xf32>
    %147 = tpu.matmul %112, %146, %cst_56 {dimension_numbers = #tpu.dot_dimension_numbers<[1], [0], [0], [1], [0, 0, 1, 1], [], []>} : vector<16x128xbf16>, vector<128x128xbf16>, vector<16x128xf32> -> vector<16x128xf32>
    %c90 = arith.constant 90 : index
    %c0_57 = arith.constant 0 : index
    %148 = vector.load %arg2[%c90, %c0_57] : memref<96x128xf32, #tpu.memory_space<vmem>>, vector<1x128xf32>
    %149 = vector.broadcast %148 : vector<1x128xf32> to vector<16x128xf32>
    %150 = arith.addf %147, %149 : vector<16x128xf32>
    %151 = arith.addf %145, %150 : vector<16x128xf32>
    %cst_58 = arith.constant 0.000000e+00 : f32
    %152 = vector.broadcast %cst_58 : f32 to vector<16x128xf32>
    %153 = arith.maximumf %151, %152 : vector<16x128xf32>
    %154 = arith.truncf %153 : vector<16x128xf32> to vector<16x128xbf16>
    %c2048 = arith.constant 2048 : index
    %c0_59 = arith.constant 0 : index
    %155 = vector.load %arg1[%c2048, %c0_59] : memref<3712x128xbf16, #tpu.memory_space<vmem>>, vector<128x128xbf16>
    %cst_60 = arith.constant dense<0.000000e+00> : vector<16x128xf32>
    %156 = tpu.matmul %154, %155, %cst_60 {dimension_numbers = #tpu.dot_dimension_numbers<[1], [0], [0], [1], [0, 0, 1, 1], [], []>} : vector<16x128xbf16>, vector<128x128xbf16>, vector<16x128xf32> -> vector<16x128xf32>
    %c83 = arith.constant 83 : index
    %c0_61 = arith.constant 0 : index
    %157 = vector.load %arg2[%c83, %c0_61] : memref<96x128xf32, #tpu.memory_space<vmem>>, vector<1x128xf32>
    %158 = vector.broadcast %157 : vector<1x128xf32> to vector<16x128xf32>
    %159 = arith.addf %156, %158 : vector<16x128xf32>
    %cst_62 = arith.constant 0.000000e+00 : f32
    %160 = vector.broadcast %cst_62 : f32 to vector<16x128xf32>
    %161 = arith.maximumf %159, %160 : vector<16x128xf32>
    %162 = arith.truncf %161 : vector<16x128xf32> to vector<16x128xbf16>
    %c2304 = arith.constant 2304 : index
    %c0_63 = arith.constant 0 : index
    %163 = vector.load %arg1[%c2304, %c0_63] : memref<3712x128xbf16, #tpu.memory_space<vmem>>, vector<128x128xbf16>
    %cst_64 = arith.constant dense<0.000000e+00> : vector<16x128xf32>
    %164 = tpu.matmul %162, %163, %cst_64 {dimension_numbers = #tpu.dot_dimension_numbers<[1], [0], [0], [1], [0, 0, 1, 1], [], []>} : vector<16x128xbf16>, vector<128x128xbf16>, vector<16x128xf32> -> vector<16x128xf32>
    %c87 = arith.constant 87 : index
    %c0_65 = arith.constant 0 : index
    %165 = vector.load %arg2[%c87, %c0_65] : memref<96x128xf32, #tpu.memory_space<vmem>>, vector<1x128xf32>
    %166 = vector.broadcast %165 : vector<1x128xf32> to vector<16x128xf32>
    %167 = arith.addf %164, %166 : vector<16x128xf32>
    %cst_66 = arith.constant 0.000000e+00 : f32
    %168 = vector.broadcast %cst_66 : f32 to vector<16x128xf32>
    %169 = arith.maximumf %167, %168 : vector<16x128xf32>
    %c2432 = arith.constant 2432 : index
    %c0_67 = arith.constant 0 : index
    %170 = vector.load %arg1[%c2432, %c0_67] : memref<3712x128xbf16, #tpu.memory_space<vmem>>, vector<128x128xbf16>
    %cst_68 = arith.constant dense<0.000000e+00> : vector<16x128xf32>
    %171 = tpu.matmul %154, %170, %cst_68 {dimension_numbers = #tpu.dot_dimension_numbers<[1], [0], [0], [1], [0, 0, 1, 1], [], []>} : vector<16x128xbf16>, vector<128x128xbf16>, vector<16x128xf32> -> vector<16x128xf32>
    %c91 = arith.constant 91 : index
    %c0_69 = arith.constant 0 : index
    %172 = vector.load %arg2[%c91, %c0_69] : memref<96x128xf32, #tpu.memory_space<vmem>>, vector<1x128xf32>
    %173 = vector.broadcast %172 : vector<1x128xf32> to vector<16x128xf32>
    %174 = arith.addf %171, %173 : vector<16x128xf32>
    %175 = arith.addf %169, %174 : vector<16x128xf32>
    %cst_70 = arith.constant 0.000000e+00 : f32
    %176 = vector.broadcast %cst_70 : f32 to vector<16x128xf32>
    %177 = arith.maximumf %175, %176 : vector<16x128xf32>
    %c0_71 = arith.constant 0 : index
    %c0_72 = arith.constant 0 : index
    %178 = vector.load %arg2[%c0_71, %c0_72] : memref<96x128xf32, #tpu.memory_space<vmem>>, vector<16x128xf32>
    %179 = arith.mulf %177, %178 : vector<16x128xf32>
    %180 = tpu.iota {dimensions = array<i32: 0>} : vector<64x1xi32>
    %c32_i32 = arith.constant 32 : i32
    %c0_i32_73 = arith.constant 0 : i32
    %181 = arith.cmpi eq, %c32_i32, %c0_i32_73 : i32
    %c1_i32_74 = arith.constant 1 : i32
    %182 = arith.select %181, %c1_i32_74, %c32_i32 : i32
    %183 = vector.broadcast %182 : i32 to vector<64x1xi32>
    %184 = arith.remsi %180, %183 : vector<64x1xi32>
    %c0_i32_75 = arith.constant 0 : i32
    %185 = vector.broadcast %c0_i32_75 : i32 to vector<64x1xi32>
    %186 = arith.cmpi ne, %184, %185 : vector<64x1xi32>
    %c0_i32_76 = arith.constant 0 : i32
    %187 = vector.broadcast %c0_i32_76 : i32 to vector<64x1xi32>
    %188 = arith.cmpi slt, %184, %187 : vector<64x1xi32>
    %c0_i32_77 = arith.constant 0 : i32
    %189 = arith.cmpi slt, %182, %c0_i32_77 : i32
    %190 = vector.broadcast %189 : i1 to vector<64x1xi1>
    %191 = vector.broadcast %190 : vector<64x1xi1> to vector<64x1xi1>
    %192 = arith.xori %188, %191 : vector<64x1xi1>
    %193 = arith.andi %192, %186 : vector<64x1xi1>
    %194 = vector.broadcast %182 : i32 to vector<64x1xi32>
    %195 = arith.addi %184, %194 : vector<64x1xi32>
    %196 = arith.select %193, %195, %184 : vector<64x1xi1>, vector<64x1xi32>
    %c28_i32 = arith.constant 28 : i32
    %197 = vector.broadcast %c28_i32 : i32 to vector<64x1xi32>
    %198 = arith.cmpi slt, %196, %197 : vector<64x1xi32>
    %c1_i32_78 = arith.constant 1 : i32
    %199 = tpu.dynamic_rotate %9 by %c1_i32_78 dim 0 : vector<64x128xf32>, i32 -> vector<64x128xf32>
    %c63_i32 = arith.constant 63 : i32
    %200 = tpu.dynamic_rotate %9 by %c63_i32 dim 0 : vector<64x128xf32>, i32 -> vector<64x128xf32>
    %201 = tpu.concatenate %199, %9, %200 in 1 : vector<64x128xf32>, vector<64x128xf32>, vector<64x128xf32> -> vector<64x384xf32>
    %202 = arith.truncf %201 : vector<64x384xf32> to vector<64x384xbf16>
    %c2560 = arith.constant 2560 : index
    %c0_79 = arith.constant 0 : index
    %203 = vector.load %arg1[%c2560, %c0_79] : memref<3712x128xbf16, #tpu.memory_space<vmem>>, vector<384x128xbf16>
    %cst_80 = arith.constant dense<0.000000e+00> : vector<64x128xf32>
    %204 = tpu.matmul %202, %203, %cst_80 {dimension_numbers = #tpu.dot_dimension_numbers<[1], [0], [0], [1], [0, 0, 1, 1], [], []>} : vector<64x384xbf16>, vector<384x128xbf16>, vector<64x128xf32> -> vector<64x128xf32>
    %c92 = arith.constant 92 : index
    %c0_81 = arith.constant 0 : index
    %205 = vector.load %arg2[%c92, %c0_81] : memref<96x128xf32, #tpu.memory_space<vmem>>, vector<1x128xf32>
    %206 = vector.broadcast %205 : vector<1x128xf32> to vector<64x128xf32>
    %207 = arith.addf %204, %206 : vector<64x128xf32>
    %cst_82 = arith.constant 0.000000e+00 : f32
    %208 = vector.shape_cast %198 : vector<64x1xi1> to vector<64x1xi1>
    %209 = vector.broadcast %208 : vector<64x1xi1> to vector<64x128xi1>
    %210 = vector.broadcast %cst_82 : f32 to vector<64x128xf32>
    %211 = arith.select %209, %207, %210 : vector<64x128xi1>, vector<64x128xf32>
    %cst_83 = arith.constant 0.000000e+00 : f32
    %212 = vector.broadcast %cst_83 : f32 to vector<64x128xf32>
    %213 = arith.maximumf %211, %212 : vector<64x128xf32>
    %c1_i32_84 = arith.constant 1 : i32
    %214 = tpu.dynamic_rotate %213 by %c1_i32_84 dim 0 : vector<64x128xf32>, i32 -> vector<64x128xf32>
    %c63_i32_85 = arith.constant 63 : i32
    %215 = tpu.dynamic_rotate %213 by %c63_i32_85 dim 0 : vector<64x128xf32>, i32 -> vector<64x128xf32>
    %216 = tpu.concatenate %214, %213, %215 in 1 : vector<64x128xf32>, vector<64x128xf32>, vector<64x128xf32> -> vector<64x384xf32>
    %217 = arith.truncf %216 : vector<64x384xf32> to vector<64x384xbf16>
    %c2944 = arith.constant 2944 : index
    %c0_86 = arith.constant 0 : index
    %218 = vector.load %arg1[%c2944, %c0_86] : memref<3712x128xbf16, #tpu.memory_space<vmem>>, vector<384x128xbf16>
    %cst_87 = arith.constant dense<0.000000e+00> : vector<64x128xf32>
    %219 = tpu.matmul %217, %218, %cst_87 {dimension_numbers = #tpu.dot_dimension_numbers<[1], [0], [0], [1], [0, 0, 1, 1], [], []>} : vector<64x384xbf16>, vector<384x128xbf16>, vector<64x128xf32> -> vector<64x128xf32>
    %c93 = arith.constant 93 : index
    %c0_88 = arith.constant 0 : index
    %220 = vector.load %arg2[%c93, %c0_88] : memref<96x128xf32, #tpu.memory_space<vmem>>, vector<1x128xf32>
    %221 = vector.broadcast %220 : vector<1x128xf32> to vector<64x128xf32>
    %222 = arith.addf %219, %221 : vector<64x128xf32>
    %cst_89 = arith.constant 0.000000e+00 : f32
    %223 = vector.shape_cast %198 : vector<64x1xi1> to vector<64x1xi1>
    %224 = vector.broadcast %223 : vector<64x1xi1> to vector<64x128xi1>
    %225 = vector.broadcast %cst_89 : f32 to vector<64x128xf32>
    %226 = arith.select %224, %222, %225 : vector<64x128xi1>, vector<64x128xf32>
    %227 = vector.extract_strided_slice %226 {offsets = [0, 0], sizes = [32, 128], strides = [1, 1]} : vector<64x128xf32> to vector<32x128xf32>
    %cst_90 = arith.constant dense<0.000000e+00> : vector<128xf32>
    %228 = vector.multi_reduction <add>, %227, %cst_90 [0] : vector<32x128xf32> to vector<128xf32>
    %229 = vector.shape_cast %228 : vector<128xf32> to vector<1x128xf32>
    %230 = vector.extract_strided_slice %226 {offsets = [32, 0], sizes = [32, 128], strides = [1, 1]} : vector<64x128xf32> to vector<32x128xf32>
    %cst_91 = arith.constant dense<0.000000e+00> : vector<128xf32>
    %231 = vector.multi_reduction <add>, %230, %cst_91 [0] : vector<32x128xf32> to vector<128xf32>
    %232 = vector.shape_cast %231 : vector<128xf32> to vector<1x128xf32>
    %233 = tpu.concatenate %229, %232 in 0 : vector<1x128xf32>, vector<1x128xf32> -> vector<2x128xf32>
    %234 = arith.truncf %233 : vector<2x128xf32> to vector<2x128xbf16>
    %c3456 = arith.constant 3456 : index
    %c0_92 = arith.constant 0 : index
    %235 = vector.load %arg1[%c3456, %c0_92] : memref<3712x128xbf16, #tpu.memory_space<vmem>>, vector<128x128xbf16>
    %cst_93 = arith.constant dense<0.000000e+00> : vector<2x128xf32>
    %236 = tpu.matmul %234, %235, %cst_93 {dimension_numbers = #tpu.dot_dimension_numbers<[1], [0], [0], [1], [0, 0, 1, 1], [], []>} : vector<2x128xbf16>, vector<128x128xbf16>, vector<2x128xf32> -> vector<2x128xf32>
    %237 = arith.negf %236 : vector<2x128xf32>
    %238 = math.exp %237 : vector<2x128xf32>
    %cst_94 = arith.constant 1.000000e+00 : f32
    %239 = vector.broadcast %cst_94 : f32 to vector<2x128xf32>
    %240 = arith.addf %239, %238 : vector<2x128xf32>
    %241 = arith.divf %239, %240 : vector<2x128xf32>
    %242 = arith.truncf %241 : vector<2x128xf32> to vector<2x128xbf16>
    %c3584 = arith.constant 3584 : index
    %c0_95 = arith.constant 0 : index
    %243 = vector.load %arg1[%c3584, %c0_95] : memref<3712x128xbf16, #tpu.memory_space<vmem>>, vector<128x128xbf16>
    %cst_96 = arith.constant dense<0.000000e+00> : vector<2x128xf32>
    %244 = tpu.matmul %242, %243, %cst_96 {dimension_numbers = #tpu.dot_dimension_numbers<[1], [0], [0], [1], [0, 0, 1, 1], [], []>} : vector<2x128xbf16>, vector<128x128xbf16>, vector<2x128xf32> -> vector<2x128xf32>
    %245 = vector.extract_strided_slice %244 {offsets = [0, 0], sizes = [1, 128], strides = [1, 1]} : vector<2x128xf32> to vector<1x128xf32>
    %246 = vector.shape_cast %245 : vector<1x128xf32> to vector<1x128xf32>
    %247 = vector.broadcast %246 : vector<1x128xf32> to vector<32x128xf32>
    %248 = vector.extract_strided_slice %244 {offsets = [1, 0], sizes = [1, 128], strides = [1, 1]} : vector<2x128xf32> to vector<1x128xf32>
    %249 = vector.shape_cast %248 : vector<1x128xf32> to vector<1x128xf32>
    %250 = vector.broadcast %249 : vector<1x128xf32> to vector<32x128xf32>
    %251 = tpu.concatenate %247, %250 in 0 : vector<32x128xf32>, vector<32x128xf32> -> vector<64x128xf32>
    %252 = arith.mulf %226, %226 : vector<64x128xf32>
    %253 = arith.mulf %252, %251 : vector<64x128xf32>
    %254 = arith.truncf %253 : vector<64x128xf32> to vector<64x128xbf16>
    %c3328 = arith.constant 3328 : index
    %c0_97 = arith.constant 0 : index
    %255 = vector.load %arg1[%c3328, %c0_97] : memref<3712x128xbf16, #tpu.memory_space<vmem>>, vector<128x128xbf16>
    %cst_98 = arith.constant dense<0.000000e+00> : vector<64x128xf32>
    %256 = tpu.matmul %254, %255, %cst_98 {dimension_numbers = #tpu.dot_dimension_numbers<[1], [0], [0], [1], [0, 0, 1, 1], [], []>} : vector<64x128xbf16>, vector<128x128xbf16>, vector<64x128xf32> -> vector<64x128xf32>
    %c16 = arith.constant 16 : index
    %c0_99 = arith.constant 0 : index
    %257 = vector.load %arg2[%c16, %c0_99] : memref<96x128xf32, #tpu.memory_space<vmem>>, vector<64x128xf32>
    %258 = arith.mulf %256, %257 : vector<64x128xf32>
    %259 = tpu.iota {dimensions = array<i32: 0>} : vector<2x1xi32>
    %cst_100 = arith.constant 0.000000e+00 : f32
    %260 = vector.broadcast %cst_100 : f32 to vector<2x1xf32>
    %261 = vector.extract_strided_slice %179 {offsets = [0, 0], sizes = [8, 128], strides = [1, 1]} : vector<16x128xf32> to vector<8x128xf32>
    %262 = vector.shape_cast %261 : vector<8x128xf32> to vector<1x8x128xf32>
    %cst_101 = arith.constant dense<0.000000e+00> : vector<1xf32>
    %263 = vector.multi_reduction <add>, %262, %cst_101 [1, 2] : vector<1x8x128xf32> to vector<1xf32>
    %264 = vector.shape_cast %263 : vector<1xf32> to vector<1x1x1xf32>
    %265 = vector.extract %264[0, 0, 0] : f32 from vector<1x1x1xf32>
    %266 = vector.extract_strided_slice %258 {offsets = [0, 0], sizes = [32, 128], strides = [1, 1]} : vector<64x128xf32> to vector<32x128xf32>
    %267 = vector.shape_cast %266 : vector<32x128xf32> to vector<1x32x128xf32>
    %cst_102 = arith.constant dense<0.000000e+00> : vector<1xf32>
    %268 = vector.multi_reduction <add>, %267, %cst_102 [1, 2] : vector<1x32x128xf32> to vector<1xf32>
    %269 = vector.shape_cast %268 : vector<1xf32> to vector<1x1x1xf32>
    %270 = vector.extract %269[0, 0, 0] : f32 from vector<1x1x1xf32>
    %271 = arith.addf %265, %270 : f32
    %c0_i32_103 = arith.constant 0 : i32
    %272 = vector.broadcast %c0_i32_103 : i32 to vector<2x1xi32>
    %273 = arith.cmpi eq, %259, %272 : vector<2x1xi32>
    %cst_104 = arith.constant 0.000000e+00 : f32
    %274 = vector.broadcast %271 : f32 to vector<2x1xf32>
    %275 = vector.broadcast %cst_104 : f32 to vector<2x1xf32>
    %276 = arith.select %273, %274, %275 : vector<2x1xi1>, vector<2x1xf32>
    %277 = arith.addf %260, %276 : vector<2x1xf32>
    %278 = vector.extract_strided_slice %179 {offsets = [8, 0], sizes = [8, 128], strides = [1, 1]} : vector<16x128xf32> to vector<8x128xf32>
    %279 = vector.shape_cast %278 : vector<8x128xf32> to vector<1x8x128xf32>
    %cst_105 = arith.constant dense<0.000000e+00> : vector<1xf32>
    %280 = vector.multi_reduction <add>, %279, %cst_105 [1, 2] : vector<1x8x128xf32> to vector<1xf32>
    %281 = vector.shape_cast %280 : vector<1xf32> to vector<1x1x1xf32>
    %282 = vector.extract %281[0, 0, 0] : f32 from vector<1x1x1xf32>
    %283 = vector.extract_strided_slice %258 {offsets = [32, 0], sizes = [32, 128], strides = [1, 1]} : vector<64x128xf32> to vector<32x128xf32>
    %284 = vector.shape_cast %283 : vector<32x128xf32> to vector<1x32x128xf32>
    %cst_106 = arith.constant dense<0.000000e+00> : vector<1xf32>
    %285 = vector.multi_reduction <add>, %284, %cst_106 [1, 2] : vector<1x32x128xf32> to vector<1xf32>
    %286 = vector.shape_cast %285 : vector<1xf32> to vector<1x1x1xf32>
    %287 = vector.extract %286[0, 0, 0] : f32 from vector<1x1x1xf32>
    %288 = arith.addf %282, %287 : f32
    %c1_i32_107 = arith.constant 1 : i32
    %289 = vector.broadcast %c1_i32_107 : i32 to vector<2x1xi32>
    %290 = arith.cmpi eq, %259, %289 : vector<2x1xi32>
    %cst_108 = arith.constant 0.000000e+00 : f32
    %291 = vector.broadcast %288 : f32 to vector<2x1xf32>
    %292 = vector.broadcast %cst_108 : f32 to vector<2x1xf32>
    %293 = arith.select %290, %291, %292 : vector<2x1xi1>, vector<2x1xf32>
    %294 = arith.addf %277, %293 : vector<2x1xf32>
    %c0_109 = arith.constant 0 : index
    %295 = memref.load %arg3[%c0_109] : memref<1xf32, #tpu.memory_space<smem>>
    %296 = vector.broadcast %295 : f32 to vector<2x1xf32>
    %297 = arith.addf %294, %296 : vector<2x1xf32>
    %cst_110 = arith.constant 0.000000e+00 : f32
    %298 = vector.broadcast %cst_110 : f32 to vector<2x1xf32>
    %299 = arith.maximumf %297, %298 : vector<2x1xf32>
    %c0_111 = arith.constant 0 : index
    %c0_112 = arith.constant 0 : index
    %300 = vector.load %arg4[%c0_111, %c0_112] : memref<2x1xf32, #tpu.memory_space<vmem>>, vector<2x1xf32>
    tpu.vector_store %arg4[%c0_111, %c0_112], %299 {strides = array<i32>} : memref<2x1xf32, #tpu.memory_space<vmem>>, vector<2x1xf32>,
    return
  }
}

</mosaic_0001>

<bundles_post_ra>
// kernel: my_block_forward.1
= control target key start
LH: loop header
LB: loop body
LE: loop exit
PB: predicated region body
PF: predicated region fallthrough
CT: control target
= control target key end

     0   :  { %10 = vsyncpa [#allocation4], 0  ;;  %s4352_s15 = smov [#allocation3]   ;;  %s4926_s0 = inlined_call_operand.vmem [shape: f32[56,120], index: 0, kind: input, shape index: {}]   ;;  %s4927_s1 = inlined_call_operand.hbm [shape: bf16[3712,128], index: 1, kind: input, shape index: {}]   ;;  %s4928_s2 = inlined_call_operand.vmem [shape: f32[96,128], index: 2, kind: input, shape index: {}]   ;;  %s4929_s3 = inlined_call_operand.<no memory space> [shape: f32[1], index: 3, kind: input, shape index: {}]   ;;  %s4930_s4 = inlined_call_operand.vmem [shape: f32[2,1], index: 4, kind: output, shape index: {}]  }
   0x1   :  { %s18_s16 = sshll.u32 %s4352_s15, 4  ;;  %s19_s16 = int_to_ptr.vmem [resolvable:$true] %s18_s16 }
   0x2   :  { %s4338_s17 = scalar_lea.vmem %s19_s16, 29696  ;;  %p4343_p1 = scmp.lt.s32.totalorder %s19_s16, %s19_s16 }
   0x3   :  { %p4339_p0 = scmp.ne.s32.totalorder %s19_s16, %s4338_s17  ;;  %p4344_p2 = scmp.lt.s32.totalorder %s4338_s17, %s4338_s17 }
   0x5   :  { %p4345_p3 = por %p4344_p2, %p4343_p1 }
   0x7   :  { %p4346_p4 = pnand %p4345_p3, %p4339_p0 }
   0x9   :  { %4349 = shalt.err (!%p4346_p4)
}
   0xa   :  { %s4353_s18 = smov 64   ;;  %s4354_s19 = smov 4  }
   0xb   :  { %24 = dma.hbm_to_vmem [thread:$0]  %s4927_s1, 29696, %s19_s16, [#allocation4], %s4353_s18, %s4353_s18, %s4354_s19  }
   0xc   :  { %4350 = dma.done.wait [#allocation4], 29696  }
   0xd   :  { %4351 = vsyncadd [#allocation4], 4294937600  ;;  %v4355_v0 = vmov 0.0   ;;  %v4109_v1 = vld [vmem:[#allocation3 + $0x78] sm:$0xff]   ;;  %v4111_v3 = vld [vmem:[#allocation3 + $0x70] sm:$0xff]   ;;  %v77_v6 = vlaneseq  ;;  %vm40_vm0 = vcmask 982016  }
   0xe   :  { %3863 = vmatprep.subr.bf16.mxu0 %v4355_v0  ;;  %v4110_v2 = vld [vmem:[#allocation3 + $0x38] sm:$0xff]   ;;  %3543 = vmatprep.subr.bf16.mxu1 %v4109_v1  ;;  %v4112_v4 = vld [vmem:[#allocation3 + $0x30] sm:$0xff]   ;;  %v4113_v5 = vld [vmem:[#allocation3 + $0x68] sm:$0xff]   ;;  %vm67_vm1 = vcmask 1040384   ;;  %vm74_vm2 = vcmask 1044480   ;;  %vm4356_vm8 = vmmov 0  }
   0xf   :  { %3544 = vmatpush3.bf16.msra.mxu1 %v4110_v2  ;;  %v4114_v7 = vld [vmem:[#allocation3 + $0x28] sm:$0xff]   ;;  %v4115_v8 = vld [vmem:[#allocation3 + $0x60] sm:$0xff]   ;;  %v4387_v9 = vshrl.u32 %v77_v6, 7  ;;  %v4117_v11 = vld [vmem:[#allocation3 + $0x58] sm:$0xff]   ;;  %3879 = vmatprep.mubr.msk.bf16.mxu0 %vm4356_vm8, %v4355_v0 }
  0x10   :  { %3545 = vmatprep.subr.bf16.mxu1 %v4111_v3  ;;  %v4116_v10 = vld [vmem:[#allocation3 + $0x20] sm:$0xff]   ;;  %v4118_v13 = vld [vmem:[#allocation3 + $0x18] sm:$0xff]   ;;  %v4119_v14 = vld [vmem:[#allocation3 + $0x50] sm:$0xff]  }
  0x11   :  { %v79_v12 = vadd.s32 8, %v4387_v9  ;;  %v35_v15 = vld [vmem:[%s4926_s0 + $0x10] sm:$0xff]  ;;  %v36_v16 = vld [vmem:[%s4926_s0 + $0x18] sm:$0xff]  ;;  %v4397_v17 = vand.u32 7, %v4387_v9  ;;  %v4121_v25 = vld [vmem:[#allocation3 + $0x48] sm:$0xff]   ;;  %vm109_vm3 = vcmp.lt.s32.totalorder %v4387_v9, 1 }
  0x12   :  { %v39_v18 = vld [vmem:[%s4926_s0 + $0x30] sm:$0xff]  ;;  %v4403_v19 = vsel %vm40_vm0, %v35_v15, 0.0  ;;  %v4406_v20 = vsel %vm40_vm0, %v36_v16, 0.0  ;;  %vm4424_vm4 = vmpackc.low %vm74_vm2, %vm74_vm2  ;;  %v4127_v31 = vld [vmem:[#allocation3 + $0x138] sm:$0xff]   ;;  %vm598_vm9 = vcmp.lt.s32.totalorder %v4387_v9, 2  ;;  %vm1087_vm13 = vcmp.lt.s32.totalorder %v4387_v9, 4 }
  0x13   :  { %3546 = vmatpush3.bf16.msra.mxu1 %v4112_v4  ;;  %v4408_v21 = vand.u32 7, %v79_v12  ;;  %v4411_v22 = vsel %vm40_vm0, %v39_v18, 0.0  ;;  %v4414_v23 = vrot.slane %v4403_v19, 7  ;;  %v4120_v24 = vld [vmem:[#allocation3 + $0x10] sm:$0xff]   ;;  %v69_v26 = vrot.slane %v4406_v20, 7  ;;  %v4122_v32 = vld [vmem:[#allocation3 + $0x8] sm:$0xff]   ;;  %3864 = vmatpush3.bf16.msra.mxu0 %v4127_v31 }
  0x14   :  { %3547 = vmatprep.subr.bf16.mxu1 %v4113_v5  ;;  %v72_v27 = vrot.slane %v4411_v22, 3  ;;  %vm105_vm5 = vcmp.ge.s32.totalorder %v4397_v17, 1  ;;  %v4123_v33 = vld [vmem:[#allocation3 + $0x40] sm:$0xff]   ;;  %v4130_v38 = vld [vmem:[#allocation3 + $0x130] sm:$0xff]   ;;  %3865 = vmatprep.subr.bf16.mxu0 %v4355_v0  ;;  %v4133_v43 = vld [vmem:[#allocation3 + $0x128] sm:$0xff]   ;;  %vm594_vm10 = vcmp.ge.s32.totalorder %v4397_v17, 2 }
  0x15   :  { %v70_v28 = vsel %vm67_vm1, %v4414_v23, %v69_v26  ;;  %vm106_vm6 = vcmp.ge.s32.totalorder %v4408_v21, 1  ;;  %v4124_v39 = vld [vmem:[#allocation3] sm:$0xff]   ;;  %v4125_v44 = vld [vmem:[#allocation3 + $0xf8] sm:$0xff]   ;;  %v4128_v47 = vld [vmem:[#allocation3 + $0xf0] sm:$0xff]   ;;  %vm595_vm11 = vcmp.ge.s32.totalorder %v4408_v21, 2  ;;  %vm1083_vm14 = vcmp.ge.s32.totalorder %v4397_v17, 4 }
  0x16   :  { %v76_v29 = vsel %vm74_vm2, %v72_v27, 0.0  ;;  %v75_v34 = vsel %vm74_vm2, %v70_v28, 0.0  ;;  %v4431_v36 = vpack.c.bf16 %v72_v27, %v70_v28  ;;  %vm4441_vm7 = vmpackc.low %vm106_vm6, %vm105_vm5  ;;  %v4126_v45 = vld [vmem:[#allocation3 + $0xb8] sm:$0xff]   ;;  %v4136_v48 = vld [vmem:[#allocation3 + $0x120] sm:$0xff]   ;;  %vm1084_vm15 = vcmp.ge.s32.totalorder %v4408_v21, 4 }
  0x17   :  { %3548 = vmatpush3.bf16.msra.mxu1 %v4114_v7  ;;  %v108_v35 = vrot.slane %v76_v29, 7  ;;  %v107_v37 = vrot.slane %v75_v34, 7  ;;  %3866 = vmatpush3.bf16.msra.mxu0 %v4130_v38  ;;  %v4129_v49 = vld [vmem:[#allocation3 + $0xb0] sm:$0xff]   ;;  %v4131_v50 = vld [vmem:[#allocation3 + $0xe8] sm:$0xff]   ;;  %v4134_v52 = vld [vmem:[#allocation3 + $0xe0] sm:$0xff]   ;;  %vm2049_vm5 = vcmp.lt.s32.totalorder %v4387_v9, 7 }
  0x18   :  { %3549 = vmatprep.subr.bf16.mxu1 %v4115_v8  ;;  %3298 = vmatprep.mubr.msk.bf16.mxu1 %vm4424_vm4, %v4431_v36  ;;  %v4132_v51 = vld [vmem:[#allocation3 + $0xa8] sm:$0xff]   ;;  %v4135_v53 = vld [vmem:[#allocation3 + $0xa0] sm:$0xff]   ;;  %v4137_v54 = vld [vmem:[#allocation3 + $0xd8] sm:$0xff]  }
  0x19   :  { %v110_v41 = vsel %vm109_vm3, %v107_v37, %v108_v35  ;;  %v111_v42 = vsel %vm109_vm3, %v108_v35, %v107_v37  ;;  %3867 = vmatprep.subr.bf16.mxu0 %v4355_v0  ;;  %v4138_v55 = vld [vmem:[#allocation3 + $0x98] sm:$0xff]   ;;  %v4140_v57 = vld [vmem:[#allocation3 + $0xd0] sm:$0xff]   ;;  %v4143_v60 = vld [vmem:[#allocation3 + $0xc8] sm:$0xff]  }
  0x1a   :  { %v3300_v46 = vpack.c.bf16 %v110_v41, %v111_v42  ;;  %v4139_v56 = vld [vmem:[#allocation3 + $0x118] sm:$0xff]   ;;  %v4141_v58 = vld [vmem:[#allocation3 + $0x90] sm:$0xff]   ;;  %v4144_v61 = vld [vmem:[#allocation3 + $0x88] sm:$0xff]  }
  0x1b   :  { %3550 = vmatpush3.bf16.msra.mxu1 %v4116_v10  ;;  %3868 = vmatpush3.bf16.msra.mxu0 %v4133_v43  ;;  %v4142_v59 = vld [vmem:[#allocation3 + $0x110] sm:$0xff]   ;;  %v4145_v62 = vld [vmem:[#allocation3 + $0x108] sm:$0xff]   ;;  %v4146_v63 = vld [vmem:[#allocation3 + $0xc0] sm:$0xff]  }
  0x1c   :  { %3551 = vmatprep.subr.bf16.mxu1 %v4117_v11  ;;  %3869 = vmatprep.subr.bf16.mxu0 %v4355_v0  ;;  %v4147_v1 = vld [vmem:[#allocation3 + $0x80] sm:$0xff]   ;;  %v4149_v3 = vld [vmem:[#allocation3 + $0x1b8] sm:$0xff]   ;;  %v3279_v5 = vld [vmem:[%s4928_s2 + $0x50] ss:$0 sm:$0xff] }
  0x1d   :  { %v4148_v2 = vld [vmem:[#allocation3 + $0x100] sm:$0xff]   ;;  %v4150_v27 = vld [vmem:[#allocation3 + $0x178] sm:$0xff]   ;;  %v4151_v29 = vld [vmem:[#allocation3 + $0x1b0] sm:$0xff]  }
  0x1e   :  { %v4152_v30 = vld [vmem:[#allocation3 + $0x170] sm:$0xff]   ;;  %v4153_v31 = vld [vmem:[#allocation3 + $0x1a8] sm:$0xff]   ;;  %v4156_v35 = vld [vmem:[#allocation3 + $0x160] sm:$0xff]  }
  0x1f   :  { %3552 = vmatpush3.bf16.msra.mxu1 %v4118_v13  ;;  %3870 = vmatpush3.bf16.msra.mxu0 %v4136_v48  ;;  %v4157_v37 = vld [vmem:[#allocation3 + $0x198] sm:$0xff]   ;;  %v4159_v41 = vld [vmem:[#allocation3 + $0x190] sm:$0xff]   ;;  %v4161_v43 = vld [vmem:[#allocation3 + $0x188] sm:$0xff]  }
  0x20   :  { %3553 = vmatprep.subr.bf16.mxu1 %v4119_v14  ;;  %3871 = vmatprep.subr.bf16.mxu0 %v4355_v0  ;;  %v4160_v42 = vld [vmem:[#allocation3 + $0x150] sm:$0xff]   ;;  %v4174_v48 = vld [vmem:[#allocation3 + $0x1f8] sm:$0xff]   ;;  %vm4485_vm12 = vmpackc.low %vm595_vm11, %vm594_vm10 }
  0x21   :  { %vm4523_vm2 = vmpackc.low %vm1084_vm15, %vm1083_vm14  ;;  %v4206_v17 = vld [vmem:[#allocation3 + $0x3b0] sm:$0xff]   ;;  %v4207_v21 = vld [vmem:[#allocation3 + $0x3a8] sm:$0xff]  }
  0x22   :  { %vm3484_vm6 = vmpackc.low %vm40_vm0, %vm40_vm0 }
  0x23   :  { %3554 = vmatpush3.bf16.msra.mxu1 %v4120_v24  ;;  %3872 = vmatpush3.bf16.msra.mxu0 %v4139_v56  ;;  %v3322_v56 = vld [vmem:[%s4928_s2 + $0x58] ss:$0 sm:$0xff] }
  0x24   :  { %3555 = vmatprep.subr.bf16.mxu1 %v4121_v25  ;;  %3873 = vmatprep.subr.bf16.mxu0 %v4355_v0 }
  0x27   :  { %3556 = vmatpush3.bf16.msra.mxu1 %v4122_v32  ;;  %3874 = vmatpush3.bf16.msra.mxu0 %v4142_v59  ;;  %v4154_v32 = vld [vmem:[#allocation3 + $0x168] sm:$0xff]  }
  0x28   :  { %3557 = vmatprep.subr.bf16.mxu1 %v4123_v33  ;;  %3875 = vmatprep.subr.bf16.mxu0 %v4355_v0  ;;  %v4155_v33 = vld [vmem:[#allocation3 + $0x1a0] sm:$0xff]  }
  0x2b   :  { %3558 = vmatpush3.bf16.msra.mxu1 %v4124_v39  ;;  %3876 = vmatpush3.bf16.msra.mxu0 %v4145_v62  ;;  %v4158_v39 = vld [vmem:[#allocation3 + $0x158] sm:$0xff]  }
  0x2c   :  { %3565 = vmatprep.subr.bf16.mxu1 %v4125_v44  ;;  %3877 = vmatprep.subr.bf16.mxu0 %v4355_v0  ;;  %v4162_v44 = vld [vmem:[#allocation3 + $0x148] sm:$0xff]  }
  0x2e   :  { %3301 = vmatmul.mubr.msk.bf16.vlgmr.msra.gmra.mxu1 %vm4441_vm7, %v3300_v46  ;;  %v4164_v46 = vld [vmem:[#allocation3 + $0x140] sm:$0xff]  }
  0x2f   :  { %3566 = vmatpush3.bf16.msra.mxu1 %v4126_v45  ;;  %3878 = vmatpush3.bf16.msra.mxu0 %v4148_v2  ;;  %v4163_v45 = vld [vmem:[#allocation3 + $0x180] sm:$0xff]  }
  0x30   :  { %3567 = vmatprep.subr.bf16.mxu1 %v4128_v47  ;;  %v4173_v47 = vld [vmem:[#allocation3 + $0x238] sm:$0xff]  }
  0x31   :  { %3618 = vmatprep.subr.bf16.mxu0 %v4173_v47 }
  0x32   :  { %3880 = vmatmul.mubr.msk.bf16.vlgmr.msra.gmra.mxu0 %vm4424_vm4, %v4431_v36  ;;  %vm52_vm4 = vcmask 1043456  }
  0x33   :  { %3568 = vmatpush3.bf16.msra.mxu1 %v4129_v49  ;;  %v4175_v49 = vld [vmem:[#allocation3 + $0x230] sm:$0xff]   ;;  %3619 = vmatpush3.bf16.msra.mxu0 %v4174_v48 }
  0x34   :  { %3569 = vmatprep.subr.bf16.mxu1 %v4131_v50  ;;  %v4176_v50 = vld [vmem:[#allocation3 + $0x1f0] sm:$0xff]   ;;  %3620 = vmatprep.subr.bf16.mxu0 %v4175_v49 }
  0x37   :  { %3570 = vmatpush3.bf16.msra.mxu1 %v4132_v51  ;;  %v4177_v51 = vld [vmem:[#allocation3 + $0x228] sm:$0xff]   ;;  %3621 = vmatpush3.bf16.msra.mxu0 %v4176_v50 }
  0x38   :  { %3571 = vmatprep.subr.bf16.mxu1 %v4134_v52  ;;  %v4178_v52 = vld [vmem:[#allocation3 + $0x1e8] sm:$0xff]   ;;  %3622 = vmatprep.subr.bf16.mxu0 %v4177_v51 }
  0x3b   :  { %3572 = vmatpush3.bf16.msra.mxu1 %v4135_v53  ;;  %v4179_v53 = vld [vmem:[#allocation3 + $0x220] sm:$0xff]   ;;  %3623 = vmatpush3.bf16.msra.mxu0 %v4178_v52 }
  0x3c   :  { %3573 = vmatprep.subr.bf16.mxu1 %v4137_v54  ;;  %v4180_v54 = vld [vmem:[#allocation3 + $0x1e0] sm:$0xff]   ;;  %3624 = vmatprep.subr.bf16.mxu0 %v4179_v53 }
  0x3f   :  { %3574 = vmatpush3.bf16.msra.mxu1 %v4138_v55  ;;  %3625 = vmatpush3.bf16.msra.mxu0 %v4180_v54 }
  0x40   :  { %3575 = vmatprep.subr.bf16.mxu1 %v4140_v57  ;;  %v3302_v57 = vld [vmem:[%s4928_s2 + $0x54] ss:$0 sm:$0xff] }
  0x43   :  { %3576 = vmatpush3.bf16.msra.mxu1 %v4141_v58 }
  0x44   :  { %3577 = vmatprep.subr.bf16.mxu1 %v4143_v60 }
  0x47   :  { %3578 = vmatpush3.bf16.msra.mxu1 %v4144_v61 }
  0x48   :  { %3579 = vmatprep.subr.bf16.mxu1 %v4146_v63 }
  0x4b   :  { %3580 = vmatpush3.bf16.msra.mxu1 %v4147_v1 }
  0x4c   :  { %3596 = vmatprep.subr.bf16.mxu1 %v4149_v3 }
  0xee   :  { %v3559_v4 = vpop.f32.mrf.mxu1 }
  0xf0   :  { %v3560_v6 = vpop.f32.mrf.mxu1 }
  0xf1   :  { %v3561_v7 = vadd.f32 %v3560_v6, %v3559_v4 }
  0xf2   :  { %v3562_v8 = vpop.f32.mrf.mxu1  ;;  %v582_v34 = vpop.f32.mrf.mxu0 }
  0xf3   :  { %v287_v10 = vadd.f32 %v3561_v7, %v3279_v5  ;;  %v583_v61 = vadd.f32 %v3322_v56, %v582_v34  ;;  %v4183_v34 = vld [vmem:[#allocation3 + $0x210] sm:$0xff]  }
  0xf4   :  { %v3563_v11 = vpop.f32.mrf.mxu1  ;;  %v3881_v36 = vpop.f32.mrf.mxu0 }
  0xf5   :  { %v3564_v12 = vadd.f32 %v3563_v11, %v3562_v8  ;;  %v293_v13 = vmax.f32 %v287_v10, 0.0  ;;  %v4185_v36 = vld [vmem:[#allocation3 + $0x208] sm:$0xff]  }
  0xf6   :  { %v585_v38 = vpop.f32.mrf.mxu0 }
  0xf7   :  { %v290_v14 = vadd.f32 %v3564_v12, %v3279_v5  ;;  %v296_v16 = vrot.slane %v293_v13, 7  ;;  %v586_v5 = vadd.f32 %v3322_v56, %v585_v38  ;;  %v4187_v38 = vld [vmem:[#allocation3 + $0x200] sm:$0xff]  }
  0xf8   :  { %v3882_v40 = vpop.f32.mrf.mxu0 }
  0xf9   :  { %v294_v15 = vmax.f32 %v290_v14, 0.0  ;;  %v4189_v40 = vld [vmem:[#allocation3 + $0x2f8] sm:$0xff]  }
  0xfb   :  { %v297_v18 = vrot.slane %v294_v15, 7  ;;  %v295_v24 = vpack.c.bf16 %v294_v15, %v293_v13 }
  0xfd   :  { %v298_v25 = vsel %vm109_vm3, %v296_v16, %v297_v18  ;;  %v299_v26 = vsel %vm109_vm3, %v297_v18, %v296_v16  ;;  %468 = vmatprep.mubr.bf16.mxu1 %v295_v24  ;;  %v4165_v18 = vld [vmem:[#allocation3 + $0x278] sm:$0xff]  }
  0xfe   :  { %v3320_v28 = vpack.c.bf16 %v298_v25, %v299_v26  ;;  %v4166_v25 = vld [vmem:[#allocation3 + $0x270] sm:$0xff]   ;;  %v4167_v26 = vld [vmem:[#allocation3 + $0x268] sm:$0xff]   ;;  %v4214_v16 = vld [vmem:[#allocation3 + $0x338] sm:$0xff]  }
 0x100   :  { %3321 = vmatmul.mubr.msk.bf16.vlgmr.msra.gmra.mxu1 %vm4441_vm7, %v3320_v28  ;;  %v4169_v28 = vld [vmem:[#allocation3 + $0x258] sm:$0xff]   ;;  %vm3487_vm7 = vmpackc.low %vm52_vm4, %vm40_vm0 }
 0x101   :  { %3597 = vmatpush3.bf16.msra.mxu1 %v4150_v27  ;;  %v4168_v27 = vld [vmem:[#allocation3 + $0x260] sm:$0xff]  }
 0x102   :  { %3598 = vmatprep.subr.bf16.mxu1 %v4151_v29  ;;  %v4170_v29 = vld [vmem:[#allocation3 + $0x250] sm:$0xff]  }
 0x105   :  { %3599 = vmatpush3.bf16.msra.mxu1 %v4152_v30  ;;  %v4171_v30 = vld [vmem:[#allocation3 + $0x248] sm:$0xff]  }
 0x106   :  { %3600 = vmatprep.subr.bf16.mxu1 %v4153_v31  ;;  %v4172_v31 = vld [vmem:[#allocation3 + $0x240] sm:$0xff]  }
 0x109   :  { %3601 = vmatpush3.bf16.msra.mxu1 %v4154_v32  ;;  %v4181_v32 = vld [vmem:[#allocation3 + $0x218] sm:$0xff]  }
 0x10a   :  { %3602 = vmatprep.subr.bf16.mxu1 %v4155_v33  ;;  %v4182_v33 = vld [vmem:[#allocation3 + $0x1d8] sm:$0xff]   ;;  %3626 = vmatprep.subr.bf16.mxu0 %v4181_v32 }
 0x10b   :  { %3627 = vmatpush3.bf16.msra.mxu0 %v4182_v33  ;;  %v3374_v33 = vld [vmem:[%s4928_s2 + $0x59] ss:$0 sm:$0xff] }
 0x10c   :  { %3628 = vmatprep.subr.bf16.mxu0 %v4183_v34 }
 0x10d   :  { %3603 = vmatpush3.bf16.msra.mxu1 %v4156_v35  ;;  %v4184_v35 = vld [vmem:[#allocation3 + $0x1d0] sm:$0xff]  }
 0x10e   :  { %3604 = vmatprep.subr.bf16.mxu1 %v4157_v37  ;;  %v4186_v37 = vld [vmem:[#allocation3 + $0x1c8] sm:$0xff]  }
 0x10f   :  { %3629 = vmatpush3.bf16.msra.mxu0 %v4184_v35 }
 0x110   :  { %3630 = vmatprep.subr.bf16.mxu0 %v4185_v36 }
 0x111   :  { %3605 = vmatpush3.bf16.msra.mxu1 %v4158_v39  ;;  %v4188_v39 = vld [vmem:[#allocation3 + $0x1c0] sm:$0xff]  }
 0x112   :  { %3606 = vmatprep.subr.bf16.mxu1 %v4159_v41 }
 0x113   :  { %3631 = vmatpush3.bf16.msra.mxu0 %v4186_v37 }
 0x114   :  { %3632 = vmatprep.subr.bf16.mxu0 %v4187_v38 }
 0x115   :  { %3607 = vmatpush3.bf16.msra.mxu1 %v4160_v42  ;;  %v3334_v42 = vld [vmem:[%s4928_s2 + $0x51] ss:$0 sm:$0xff] }
 0x116   :  { %3608 = vmatprep.subr.bf16.mxu1 %v4161_v43 }
 0x117   :  { %3633 = vmatpush3.bf16.msra.mxu0 %v4188_v39 }
 0x118   :  { %3649 = vmatprep.subr.bf16.mxu0 %v4189_v40 }
 0x119   :  { %3609 = vmatpush3.bf16.msra.mxu1 %v4162_v44 }
 0x11a   :  { %3610 = vmatprep.subr.bf16.mxu1 %v4163_v45 }
 0x11d   :  { %3611 = vmatpush3.bf16.msra.mxu1 %v4164_v46 }
 0x11e   :  { %3883 = vmatprep.subr.bf16.mxu1 %v4355_v0 }
 0x1c0   :  { %v3581_v55 = vpop.f32.mrf.mxu1 }
 0x1c2   :  { %v3582_v58 = vpop.f32.mrf.mxu1 }
 0x1c3   :  { %v3583_v59 = vadd.f32 %v3582_v58, %v3581_v55 }
 0x1c4   :  { %v3584_v60 = vpop.f32.mrf.mxu1 }
 0x1c5   :  { %v471_v62 = vadd.f32 %v3583_v59, %v3302_v57  ;;  %v4191_v59 = vld [vmem:[#allocation3 + $0x2f0] sm:$0xff]  }
 0x1c6   :  { %v3585_v63 = vpop.f32.mrf.mxu1 }
 0x1c7   :  { %v477_v1 = vmax.f32 %v471_v62, 0.0  ;;  %v3586_v2 = vadd.f32 %v3585_v63, %v3584_v60  ;;  %v4192_v60 = vld [vmem:[#allocation3 + $0x2b0] sm:$0xff]   ;;  %v4194_v62 = vld [vmem:[#allocation3 + $0x2a8] sm:$0xff]  }
 0x1c9   :  { %v589_v3 = vadd.f32 %v583_v61, %v477_v1  ;;  %v474_v4 = vadd.f32 %v3586_v2, %v3302_v57  ;;  %v4190_v57 = vld [vmem:[#allocation3 + $0x2b8] sm:$0xff]   ;;  %v4193_v61 = vld [vmem:[#allocation3 + $0x2e8] sm:$0xff]  }
 0x1cb   :  { %v478_v6 = vmax.f32 %v474_v4, 0.0  ;;  %v591_v7 = vmax.f32 %v589_v3, 0.0  ;;  %v4195_v4 = vld [vmem:[#allocation3 + $0x2e0] sm:$0xff]  }
 0x1cd   :  { %v590_v8 = vadd.f32 %v586_v5, %v478_v6  ;;  %v596_v11 = vrot.slane %v591_v7, 6  ;;  %v4196_v5 = vld [vmem:[#allocation3 + $0x2a0] sm:$0xff]   ;;  %v4197_v6 = vld [vmem:[#allocation3 + $0x2d8] sm:$0xff]  }
 0x1cf   :  { %v592_v10 = vmax.f32 %v590_v8, 0.0  ;;  %v4199_v8 = vld [vmem:[#allocation3 + $0x2d0] sm:$0xff]  }
 0x1d1   :  { %v597_v12 = vrot.slane %v592_v10, 6  ;;  %v593_v13 = vpack.c.bf16 %v592_v10, %v591_v7  ;;  %v4198_v7 = vld [vmem:[#allocation3 + $0x298] sm:$0xff]   ;;  %v4200_v10 = vld [vmem:[#allocation3 + $0x290] sm:$0xff]  }
 0x1d3   :  { %v599_v14 = vsel %vm598_vm9, %v596_v11, %v597_v12  ;;  %v600_v15 = vsel %vm598_vm9, %v597_v12, %v596_v11  ;;  %773 = vmatprep.mubr.bf16.mxu1 %v593_v13  ;;  %v4201_v11 = vld [vmem:[#allocation3 + $0x2c8] sm:$0xff]  }
 0x1d4   :  { %v3352_v24 = vpack.c.bf16 %v599_v14, %v600_v15  ;;  %v4202_v12 = vld [vmem:[#allocation3 + $0x288] sm:$0xff]   ;;  %v4204_v14 = vld [vmem:[#allocation3 + $0x280] sm:$0xff]   ;;  %v4213_v15 = vld [vmem:[#allocation3 + $0x378] sm:$0xff]  }
 0x1d6   :  { %3353 = vmatmul.mubr.msk.bf16.vlgmr.msra.gmra.mxu1 %vm4485_vm12, %v3352_v24  ;;  %v4216_v24 = vld [vmem:[#allocation3 + $0x330] sm:$0xff]  }
 0x1d7   :  { %3884 = vmatpush3.bf16.msra.mxu1 %v4165_v18  ;;  %3899 = vmatprep.mubr.msk.bf16.mxu1 %vm4356_vm8, %v4355_v0  ;;  %v4215_v18 = vld [vmem:[#allocation3 + $0x370] sm:$0xff]  }
 0x1d8   :  { %3885 = vmatprep.subr.bf16.mxu1 %v4355_v0 }
 0x1db   :  { %3886 = vmatpush3.bf16.msra.mxu1 %v4166_v25  ;;  %v4217_v25 = vld [vmem:[#allocation3 + $0x368] sm:$0xff]  }
 0x1dc   :  { %3887 = vmatprep.subr.bf16.mxu1 %v4355_v0 }
 0x1df   :  { %3888 = vmatpush3.bf16.msra.mxu1 %v4167_v26  ;;  %v4218_v26 = vld [vmem:[#allocation3 + $0x328] sm:$0xff]  }
 0x1e0   :  { %3889 = vmatprep.subr.bf16.mxu1 %v4355_v0 }
 0x1e3   :  { %3890 = vmatpush3.bf16.msra.mxu1 %v4168_v27  ;;  %v4219_v27 = vld [vmem:[#allocation3 + $0x360] sm:$0xff]  }
 0x1e4   :  { %3891 = vmatprep.subr.bf16.mxu1 %v4355_v0 }
 0x1e7   :  { %3892 = vmatpush3.bf16.msra.mxu1 %v4169_v28  ;;  %v4220_v28 = vld [vmem:[#allocation3 + $0x320] sm:$0xff]  }
 0x1e8   :  { %3893 = vmatprep.subr.bf16.mxu1 %v4355_v0 }
 0x1eb   :  { %3894 = vmatpush3.bf16.msra.mxu1 %v4170_v29 }
 0x1ec   :  { %3895 = vmatprep.subr.bf16.mxu1 %v4355_v0 }
 0x1ef   :  { %3896 = vmatpush3.bf16.msra.mxu1 %v4171_v30  ;;  %v3354_v30 = vld [vmem:[%s4928_s2 + $0x55] ss:$0 sm:$0xff] }
 0x1f0   :  { %3897 = vmatprep.subr.bf16.mxu1 %v4355_v0 }
 0x1f3   :  { %3898 = vmatpush3.bf16.msra.mxu1 %v4172_v31 }
 0x1f4   :  { %3671 = vmatprep.subr.bf16.mxu1 %v4213_v15 }
 0x1f6   :  { %3900 = vmatmul.mubr.bf16.vlgmr.msra.gmra.mxu1 %v593_v13  ;;  %v4203_v13 = vld [vmem:[#allocation3 + $0x2c0] sm:$0xff]  }
 0x1f7   :  { %3672 = vmatpush3.bf16.msra.mxu1 %v4214_v16 }
 0x1f8   :  { %3673 = vmatprep.subr.bf16.mxu1 %v4215_v18 }
 0x1fb   :  { %3674 = vmatpush3.bf16.msra.mxu1 %v4216_v24 }
 0x1fc   :  { %3675 = vmatprep.subr.bf16.mxu1 %v4217_v25 }
 0x1ff   :  { %3676 = vmatpush3.bf16.msra.mxu1 %v4218_v26 }
 0x200   :  { %3677 = vmatprep.subr.bf16.mxu1 %v4219_v27 }
 0x203   :  { %3678 = vmatpush3.bf16.msra.mxu1 %v4220_v28  ;;  %v4229_v28 = vld [vmem:[#allocation3 + $0x438] sm:$0xff]  }
 0x296   :  { %v3612_v41 = vpop.f32.mrf.mxu1 }
 0x298   :  { %v3613_v43 = vpop.f32.mrf.mxu1 }
 0x299   :  { %v3614_v44 = vadd.f32 %v3613_v43, %v3612_v41 }
 0x29a   :  { %v3615_v45 = vpop.f32.mrf.mxu1 }
 0x29b   :  { %v776_v46 = vadd.f32 %v3614_v44, %v3334_v42 }
 0x29c   :  { %v3616_v47 = vpop.f32.mrf.mxu1 }
 0x29d   :  { %v3617_v48 = vadd.f32 %v3616_v47, %v3615_v45  ;;  %v782_v49 = vmax.f32 %v776_v46, 0.0 }
 0x29f   :  { %v779_v50 = vadd.f32 %v3617_v48, %v3334_v42  ;;  %v785_v52 = vrot.slane %v782_v49, 6 }
 0x2a1   :  { %v783_v51 = vmax.f32 %v779_v50, 0.0 }
 0x2a3   :  { %v786_v53 = vrot.slane %v783_v51, 6  ;;  %v784_v54 = vpack.c.bf16 %v783_v51, %v782_v49 }
 0x2a5   :  { %v787_v55 = vsel %vm598_vm9, %v785_v52, %v786_v53  ;;  %v788_v56 = vsel %vm598_vm9, %v786_v53, %v785_v52  ;;  %957 = vmatprep.mubr.bf16.mxu0 %v784_v54  ;;  %v4205_v53 = vld [vmem:[#allocation3 + $0x3b8] sm:$0xff]   ;;  %vm4357_vm9 = vmmov 1  }
 0x2a6   :  { %v3372_v58 = vpack.c.bf16 %v787_v55, %v788_v56  ;;  %v4208_v55 = vld [vmem:[#allocation3 + $0x3a0] sm:$0xff]   ;;  %v4209_v56 = vld [vmem:[#allocation3 + $0x398] sm:$0xff]   ;;  %vm3490_vm10 = vmpackc.low %vm52_vm4, %vm4357_vm9 }
 0x2a8   :  { %3373 = vmatmul.mubr.msk.bf16.vlgmr.msra.gmra.mxu0 %vm4485_vm12, %v3372_v58  ;;  %v4211_v58 = vld [vmem:[#allocation3 + $0x388] sm:$0xff]  }
 0x2a9   :  { %3650 = vmatpush3.bf16.msra.mxu0 %v4190_v57  ;;  %v4210_v57 = vld [vmem:[#allocation3 + $0x390] sm:$0xff]  }
 0x2aa   :  { %3651 = vmatprep.subr.bf16.mxu0 %v4191_v59  ;;  %v4212_v59 = vld [vmem:[#allocation3 + $0x380] sm:$0xff]  }
 0x2ad   :  { %3652 = vmatpush3.bf16.msra.mxu0 %v4192_v60  ;;  %v4221_v60 = vld [vmem:[#allocation3 + $0x358] sm:$0xff]  }
 0x2ae   :  { %3653 = vmatprep.subr.bf16.mxu0 %v4193_v61  ;;  %v4222_v61 = vld [vmem:[#allocation3 + $0x318] sm:$0xff]   ;;  %3679 = vmatprep.subr.bf16.mxu1 %v4221_v60 }
 0x2af   :  { %3680 = vmatpush3.bf16.msra.mxu1 %v4222_v61 }
 0x2b1   :  { %3654 = vmatpush3.bf16.msra.mxu0 %v4194_v62  ;;  %v4223_v62 = vld [vmem:[#allocation3 + $0x350] sm:$0xff]  }
 0x2b2   :  { %3655 = vmatprep.subr.bf16.mxu0 %v4195_v4  ;;  %3681 = vmatprep.subr.bf16.mxu1 %v4223_v62  ;;  %v4228_v4 = vld [vmem:[#allocation3 + $0x300] sm:$0xff]  }
 0x2b5   :  { %3656 = vmatpush3.bf16.msra.mxu0 %v4196_v5 }
 0x2b6   :  { %v1071_v63 = vpop.f32.mrf.mxu1  ;;  %3657 = vmatprep.subr.bf16.mxu0 %v4197_v6  ;;  %v3383_v6 = vld [vmem:[%s4928_s2 + $0x52] ss:$0 sm:$0xff] }
 0x2b7   :  { %v1072_v37 = vadd.f32 %v3374_v33, %v1071_v63  ;;  %v4224_v63 = vld [vmem:[#allocation3 + $0x310] sm:$0xff]  }
 0x2b8   :  { %v3901_v1 = vpop.f32.mrf.mxu1  ;;  %3682 = vmatpush3.bf16.msra.mxu1 %v4224_v63  ;;  %v4237_v63 = vld [vmem:[#allocation3 + $0x4f8] sm:$0xff]  }
 0x2b9   :  { %3658 = vmatpush3.bf16.msra.mxu0 %v4198_v7  ;;  %v4225_v1 = vld [vmem:[#allocation3 + $0x348] sm:$0xff]  }
 0x2ba   :  { %v1074_v2 = vpop.f32.mrf.mxu1  ;;  %3659 = vmatprep.subr.bf16.mxu0 %v4199_v8  ;;  %3683 = vmatprep.subr.bf16.mxu1 %v4225_v1 }
 0x2bb   :  { %v1075_v42 = vadd.f32 %v3374_v33, %v1074_v2  ;;  %v4226_v2 = vld [vmem:[#allocation3 + $0x308] sm:$0xff]  }
 0x2bc   :  { %v3902_v3 = vpop.f32.mrf.mxu1  ;;  %3684 = vmatpush3.bf16.msra.mxu1 %v4226_v2  ;;  %v4238_v2 = vld [vmem:[#allocation3 + $0x4f0] sm:$0xff]  }
 0x2bd   :  { %3660 = vmatpush3.bf16.msra.mxu0 %v4200_v10  ;;  %v4227_v3 = vld [vmem:[#allocation3 + $0x340] sm:$0xff]  }
 0x2be   :  { %3661 = vmatprep.subr.bf16.mxu0 %v4201_v11  ;;  %3685 = vmatprep.subr.bf16.mxu1 %v4227_v3  ;;  %v4239_v3 = vld [vmem:[#allocation3 + $0x4e8] sm:$0xff]  }
 0x2c0   :  { %3686 = vmatpush3.bf16.msra.mxu1 %v4228_v4  ;;  %v4240_v4 = vld [vmem:[#allocation3 + $0x4e0] sm:$0xff]  }
 0x2c1   :  { %3662 = vmatpush3.bf16.msra.mxu0 %v4202_v12  ;;  %3923 = vmatprep.subr.bf16.mxu1 %v4355_v0 }
 0x2c2   :  { %3663 = vmatprep.subr.bf16.mxu0 %v4203_v13 }
 0x2c5   :  { %3664 = vmatpush3.bf16.msra.mxu0 %v4204_v14 }
 0x2c6   :  { %3903 = vmatprep.subr.bf16.mxu0 %v4355_v0 }
 0x368   :  { %v3634_v29 = vpop.f32.mrf.mxu0 }
 0x36a   :  { %v3635_v31 = vpop.f32.mrf.mxu0 }
 0x36b   :  { %v3636_v32 = vadd.f32 %v3635_v31, %v3634_v29  ;;  %v4231_v31 = vld [vmem:[#allocation3 + $0x428] sm:$0xff]  }
 0x36c   :  { %v3637_v34 = vpop.f32.mrf.mxu0 }
 0x36d   :  { %v960_v35 = vadd.f32 %v3636_v32, %v3354_v30  ;;  %v4232_v32 = vld [vmem:[#allocation3 + $0x420] sm:$0xff]  }
 0x36e   :  { %v3638_v36 = vpop.f32.mrf.mxu0 }
 0x36f   :  { %v966_v38 = vmax.f32 %v960_v35, 0.0  ;;  %v3639_v39 = vadd.f32 %v3638_v36, %v3637_v34 }
 0x371   :  { %v1078_v40 = vadd.f32 %v1072_v37, %v966_v38  ;;  %v963_v41 = vadd.f32 %v3639_v39, %v3354_v30  ;;  %v4230_v30 = vld [vmem:[#allocation3 + $0x430] sm:$0xff]   ;;  %v4233_v37 = vld [vmem:[#allocation3 + $0x418] sm:$0xff]   ;;  %v4235_v39 = vld [vmem:[#allocation3 + $0x408] sm:$0xff]  }
 0x372   :  { %v4234_v38 = vld [vmem:[#allocation3 + $0x410] sm:$0xff]  }
 0x373   :  { %v967_v43 = vmax.f32 %v963_v41, 0.0  ;;  %v1080_v44 = vmax.f32 %v1078_v40, 0.0  ;;  %v4236_v40 = vld [vmem:[#allocation3 + $0x400] sm:$0xff]   ;;  %v4245_v41 = vld [vmem:[#allocation3 + $0x4b8] sm:$0xff]  }
 0x375   :  { %v1079_v45 = vadd.f32 %v1075_v42, %v967_v43  ;;  %v1085_v47 = vrot.slane %v1080_v44, 4  ;;  %v4246_v42 = vld [vmem:[#allocation3 + $0x4b0] sm:$0xff]   ;;  %v4247_v43 = vld [vmem:[#allocation3 + $0x4a8] sm:$0xff]  }
 0x377   :  { %v1081_v46 = vmax.f32 %v1079_v45, 0.0  ;;  %v4249_v45 = vld [vmem:[#allocation3 + $0x498] sm:$0xff]  }
 0x379   :  { %v1086_v48 = vrot.slane %v1081_v46, 4  ;;  %v1082_v49 = vpack.c.bf16 %v1081_v46, %v1080_v44  ;;  %v4248_v44 = vld [vmem:[#allocation3 + $0x4a0] sm:$0xff]   ;;  %v4250_v46 = vld [vmem:[#allocation3 + $0x490] sm:$0xff]  }
 0x37b   :  { %v1088_v50 = vsel %vm1087_vm13, %v1085_v47, %v1086_v48  ;;  %v1089_v51 = vsel %vm1087_vm13, %v1086_v48, %v1085_v47  ;;  %1262 = vmatprep.mubr.bf16.mxu0 %v1082_v49  ;;  %v3403_v48 = vld [vmem:[%s4928_s2 + $0x56] ss:$0 sm:$0xff] }
 0x37c   :  { %v3401_v54 = vpack.c.bf16 %v1088_v50, %v1089_v51 }
 0x37e   :  { %3402 = vmatmul.mubr.msk.bf16.vlgmr.msra.gmra.mxu0 %vm4523_vm2, %v3401_v54 }
 0x37f   :  { %3904 = vmatpush3.bf16.msra.mxu0 %v4205_v53  ;;  %3919 = vmatprep.mubr.msk.bf16.mxu0 %vm4356_vm8, %v4355_v0  ;;  %v3423_v53 = vld [vmem:[%s4928_s2 + $0x5a] ss:$0 sm:$0xff] }
 0x380   :  { %3905 = vmatprep.subr.bf16.mxu0 %v4355_v0 }
 0x383   :  { %3906 = vmatpush3.bf16.msra.mxu0 %v4206_v17 }
 0x384   :  { %3907 = vmatprep.subr.bf16.mxu0 %v4355_v0 }
 0x387   :  { %3908 = vmatpush3.bf16.msra.mxu0 %v4207_v21 }
 0x388   :  { %3909 = vmatprep.subr.bf16.mxu0 %v4355_v0 }
 0x38b   :  { %3910 = vmatpush3.bf16.msra.mxu0 %v4208_v55 }
 0x38c   :  { %3911 = vmatprep.subr.bf16.mxu0 %v4355_v0 }
 0x38f   :  { %3912 = vmatpush3.bf16.msra.mxu0 %v4209_v56 }
 0x390   :  { %3913 = vmatprep.subr.bf16.mxu0 %v4355_v0 }
 0x393   :  { %3914 = vmatpush3.bf16.msra.mxu0 %v4210_v57 }
 0x394   :  { %3915 = vmatprep.subr.bf16.mxu0 %v4355_v0 }
 0x397   :  { %3916 = vmatpush3.bf16.msra.mxu0 %v4211_v58 }
 0x398   :  { %3917 = vmatprep.subr.bf16.mxu0 %v4355_v0 }
 0x39b   :  { %3918 = vmatpush3.bf16.msra.mxu0 %v4212_v59 }
 0x39c   :  { %3943 = vmatprep.subr.bf16.mxu0 %v4355_v0 }
 0x39e   :  { %3920 = vmatmul.mubr.bf16.vlgmr.msra.gmra.mxu0 %v1082_v49 }
 0x39f   :  { %3959 = vmatprep.mubr.msk.bf16.mxu0 %vm4356_vm8, %v4355_v0  ;;  %3944 = vmatpush3.bf16.msra.mxu0 %v4245_v41 }
 0x3a0   :  { %3945 = vmatprep.subr.bf16.mxu0 %v4355_v0 }
 0x3a3   :  { %3946 = vmatpush3.bf16.msra.mxu0 %v4246_v42 }
 0x3a4   :  { %3947 = vmatprep.subr.bf16.mxu0 %v4355_v0 }
 0x3a7   :  { %3948 = vmatpush3.bf16.msra.mxu0 %v4247_v43  ;;  %v4276_v43 = vld [vmem:[#allocation3 + $0x580] sm:$0xff]  }
 0x3a8   :  { %3949 = vmatprep.subr.bf16.mxu0 %v4355_v0 }
 0x3ab   :  { %3950 = vmatpush3.bf16.msra.mxu0 %v4248_v44 }
 0x3ac   :  { %3951 = vmatprep.subr.bf16.mxu0 %v4355_v0 }
 0x3af   :  { %3952 = vmatpush3.bf16.msra.mxu0 %v4249_v45 }
 0x3b0   :  { %3953 = vmatprep.subr.bf16.mxu0 %v4355_v0 }
 0x3b3   :  { %3954 = vmatpush3.bf16.msra.mxu0 %v4250_v46 }
 0x3b4   :  { %3955 = vmatprep.subr.bf16.mxu0 %v4355_v0 }
 0x43e   :  { %v3665_v5 = vpop.f32.mrf.mxu0 }
 0x440   :  { %v3666_v7 = vpop.f32.mrf.mxu0 }
 0x441   :  { %v3667_v8 = vadd.f32 %v3666_v7, %v3665_v5  ;;  %v4241_v5 = vld [vmem:[#allocation3 + $0x4d8] sm:$0xff]   ;;  %v4243_v7 = vld [vmem:[#allocation3 + $0x4c8] sm:$0xff]  }
 0x442   :  { %v3668_v10 = vpop.f32.mrf.mxu0 }
 0x443   :  { %v1265_v11 = vadd.f32 %v3667_v8, %v3383_v6  ;;  %v4244_v8 = vld [vmem:[#allocation3 + $0x4c0] sm:$0xff]  }
 0x444   :  { %v3669_v12 = vpop.f32.mrf.mxu0 }
 0x445   :  { %v3670_v13 = vadd.f32 %v3669_v12, %v3668_v10  ;;  %v1271_v14 = vmax.f32 %v1265_v11, 0.0  ;;  %v4251_v10 = vld [vmem:[#allocation3 + $0x488] sm:$0xff]   ;;  %v4252_v11 = vld [vmem:[#allocation3 + $0x480] sm:$0xff]   ;;  %v4253_v12 = vld [vmem:[#allocation3 + $0x578] sm:$0xff]  }
 0x446   :  { %3956 = vmatpush3.bf16.msra.mxu0 %v4251_v10 }
 0x447   :  { %v1268_v15 = vadd.f32 %v3670_v13, %v3383_v6  ;;  %v1274_v18 = vrot.slane %v1271_v14, 4  ;;  %v4242_v6 = vld [vmem:[#allocation3 + $0x4d0] sm:$0xff]   ;;  %3957 = vmatprep.subr.bf16.mxu0 %v4355_v0  ;;  %v4256_v13 = vld [vmem:[#allocation3 + $0x5b8] sm:$0xff]  }
 0x449   :  { %v1272_v16 = vmax.f32 %v1268_v15, 0.0  ;;  %v4262_v15 = vld [vmem:[#allocation3 + $0x5a8] sm:$0xff]  }
 0x44a   :  { %3958 = vmatpush3.bf16.msra.mxu0 %v4252_v11 }
 0x44b   :  { %v1275_v24 = vrot.slane %v1272_v16, 4  ;;  %v1273_v25 = vpack.c.bf16 %v1272_v16, %v1271_v14  ;;  %3729 = vmatprep.subr.bf16.mxu0 %v4253_v12  ;;  %v4259_v14 = vld [vmem:[#allocation3 + $0x5b0] sm:$0xff]   ;;  %v4265_v16 = vld [vmem:[#allocation3 + $0x5a0] sm:$0xff]  }
 0x44d   :  { %v1276_v26 = vsel %vm1087_vm13, %v1274_v18, %v1275_v24  ;;  %v1277_v27 = vsel %vm1087_vm13, %v1275_v24, %v1274_v18  ;;  %1446 = vmatprep.mubr.bf16.mxu1 %v1273_v25  ;;  %v4584_v18 = vrot.slane %v4411_v22, 4  ;;  %v4268_v24 = vld [vmem:[#allocation3 + $0x598] sm:$0xff]   ;;  %v4599_v22 = vld [vmem:[%s4926_s0 + $0x8] sm:$0xff] }
 0x44e   :  { %v3421_v29 = vpack.c.bf16 %v1276_v26, %v1277_v27  ;;  %v4271_v26 = vld [vmem:[#allocation3 + $0x590] sm:$0xff]  }
 0x44f   :  { %v4588_v25 = vsel %vm52_vm4, %v4584_v18, 0.0 }
 0x450   :  { %3422 = vmatmul.mubr.msk.bf16.vlgmr.msra.gmra.mxu1 %vm4523_vm2, %v3421_v29  ;;  %v2032_v27 = vrot.slane %v4588_v25, 7  ;;  %v53_v29 = vrot.slane %v4406_v20, 4 }
 0x451   :  { %3924 = vmatpush3.bf16.msra.mxu1 %v4229_v28  ;;  %3939 = vmatprep.mubr.msk.bf16.mxu1 %vm4356_vm8, %v4355_v0  ;;  %v4594_v28 = vld [vmem:[%s4926_s0] sm:$0xff] }
 0x452   :  { %3925 = vmatprep.subr.bf16.mxu1 %v4355_v0 }
 0x455   :  { %3926 = vmatpush3.bf16.msra.mxu1 %v4230_v30  ;;  %v4274_v30 = vld [vmem:[#allocation3 + $0x588] sm:$0xff]  }
 0x456   :  { %3927 = vmatprep.subr.bf16.mxu1 %v4355_v0 }
 0x459   :  { %3928 = vmatpush3.bf16.msra.mxu1 %v4231_v31  ;;  %v41_v31 = vsel %vm40_vm0, %v4594_v28, 0.0 }
 0x45a   :  { %3929 = vmatprep.subr.bf16.mxu1 %v4355_v0  ;;  %v2041_v44 = vrot.slane %v41_v31, 1 }
 0x45d   :  { %3930 = vmatpush3.bf16.msra.mxu1 %v4232_v32  ;;  %v42_v32 = vsel %vm40_vm0, %v4599_v22, 0.0 }
 0x45e   :  { %v1560_v33 = vpop.f32.mrf.mxu0  ;;  %3931 = vmatprep.subr.bf16.mxu1 %v4355_v0  ;;  %v2042_v45 = vrot.slane %v42_v32, 1 }
 0x45f   :  { %v1561_v55 = vadd.f32 %v3423_v53, %v1560_v33  ;;  %v37_v33 = vld [vmem:[%s4926_s0 + $0x20] sm:$0xff] }
 0x460   :  { %v3921_v34 = vpop.f32.mrf.mxu0 }
 0x461   :  { %3932 = vmatpush3.bf16.msra.mxu1 %v4233_v37  ;;  %v2025_v34 = vrot.slane %v41_v31, 7  ;;  %v2043_v37 = vrot.slane %v4403_v19, 1  ;;  %v38_v19 = vld [vmem:[%s4926_s0 + $0x28] sm:$0xff] }
 0x462   :  { %v1563_v35 = vpop.f32.mrf.mxu0  ;;  %3933 = vmatprep.subr.bf16.mxu1 %v4355_v0 }
 0x463   :  { %v1564_v57 = vadd.f32 %v3423_v53, %v1563_v35  ;;  %v2026_v35 = vrot.slane %v42_v32, 7  ;;  %v4621_v41 = vsel %vm109_vm3, %v2032_v27, %v2025_v34 }
 0x464   :  { %v3922_v36 = vpop.f32.mrf.mxu0 }
 0x465   :  { %3934 = vmatpush3.bf16.msra.mxu1 %v4234_v38  ;;  %v45_v36 = vsel %vm40_vm0, %v37_v33, 0.0 }
 0x466   :  { %3935 = vmatprep.subr.bf16.mxu1 %v4355_v0  ;;  %v54_v38 = vrot.slane %v45_v36, 4 }
 0x468   :  { %v4629_v46 = vsel %vm52_vm4, %v53_v29, %v54_v38 }
 0x469   :  { %3936 = vmatpush3.bf16.msra.mxu1 %v4235_v39  ;;  %v3485_v39 = vpack.c.bf16 %v4599_v22, %v4594_v28  ;;  %v4272_v22 = vld [vmem:[#allocation3 + $0x508] sm:$0xff]  }
 0x46a   :  { %3937 = vmatprep.subr.bf16.mxu1 %v4355_v0 }
 0x46d   :  { %3938 = vmatpush3.bf16.msra.mxu1 %v4236_v40  ;;  %v4615_v40 = vsel %vm109_vm3, %v2025_v34, %v2026_v35 }
 0x46e   :  { %3963 = vmatprep.subr.bf16.mxu1 %v4355_v0  ;;  %v2058_v42 = vpack.c.bf16 %v4615_v40, %v4621_v41  ;;  %v4278_v40 = vld [vmem:[#allocation3 + $0x670] sm:$0xff]   ;;  %v4279_v41 = vld [vmem:[#allocation3 + $0x668] sm:$0xff]  }
 0x510   :  { %v3687_v47 = vpop.f32.mrf.mxu1 }
 0x512   :  { %v3688_v49 = vpop.f32.mrf.mxu1 }
 0x513   :  { %v3689_v50 = vadd.f32 %v3688_v49, %v3687_v47  ;;  %v64_v47 = vsel %vm52_vm4, %v4406_v20, 0.0  ;;  %v2055_v49 = vsel %vm2049_vm5, %v2042_v45, %v2043_v37 }
 0x514   :  { %v3690_v51 = vpop.f32.mrf.mxu1 }
 0x515   :  { %v1449_v52 = vadd.f32 %v3689_v50, %v3403_v48  ;;  %v2056_v50 = vsel %vm2049_vm5, %v2041_v44, %v2042_v45  ;;  %v4263_v45 = vld [vmem:[#allocation3 + $0x520] sm:$0xff]  }
 0x516   :  { %v3691_v54 = vpop.f32.mrf.mxu1  ;;  %v2060_v53 = vpack.c.bf16 %v2055_v49, %v2056_v50  ;;  %v4267_v49 = vld [vmem:[#allocation3 + $0x550] sm:$0xff]  }
 0x517   :  { %v1455_v17 = vmax.f32 %v1449_v52, 0.0  ;;  %v3692_v21 = vadd.f32 %v3691_v54, %v3690_v51  ;;  %v2044_v51 = vrot.slane %v64_v47, 1  ;;  %v46_v52 = vsel %vm40_vm0, %v38_v19, 0.0  ;;  %v4258_v19 = vld [vmem:[#allocation3 + $0x568] sm:$0xff]   ;;  %v4269_v50 = vld [vmem:[#allocation3 + $0x510] sm:$0xff]  }
 0x518   :  { %v2028_v54 = vrot.slane %v64_v47, 7  ;;  %v4264_v47 = vld [vmem:[#allocation3 + $0x558] sm:$0xff]  }
 0x519   :  { %v1452_v56 = vadd.f32 %v3692_v21, %v3403_v48  ;;  %v1567_v58 = vadd.f32 %v1561_v55, %v1455_v17  ;;  %v2045_v48 = vrot.slane %v4629_v46, 1  ;;  %v4643_v17 = vsel %vm109_vm3, %v2026_v35, %v4414_v23 }
 0x51a   :  { %v2054_v55 = vsel %vm2049_vm5, %v2043_v37, %v2044_v51  ;;  %v4255_v37 = vld [vmem:[#allocation3 + $0x570] sm:$0xff]  }
 0x51b   :  { %v1456_v59 = vmax.f32 %v1452_v56, 0.0  ;;  %v1569_v61 = vmax.f32 %v1567_v58, 0.0  ;;  %v2053_v21 = vsel %vm2049_vm5, %v2044_v51, %v2045_v48  ;;  %v56_v58 = vrot.slane %v46_v52, 4  ;;  %v4270_v51 = vld [vmem:[#allocation3 + $0x548] sm:$0xff]  }
 0x51c   :  { %v2063_v56 = vpack.c.bf16 %v2053_v21, %v2054_v55  ;;  %v4329_v55 = vld [vmem:[%s4926_s0 + $0x10] sm:$0xff] }
 0x51d   :  { %v1568_v60 = vadd.f32 %v1564_v57, %v1456_v59  ;;  %v4652_v57 = vsel %vm109_vm3, %v4414_v23, %v2028_v54 }
 0x51e   :  { %v2061_v59 = vpack.c.bf16 %v4652_v57, %v4643_v17  ;;  %v4284_v17 = vld [vmem:[#allocation3 + $0x658] sm:$0xff]   ;;  %v4283_v57 = vld [vmem:[#allocation3 + $0x630] sm:$0xff]  }
 0x51f   :  { %v1570_v62 = vmax.f32 %v1568_v60, 0.0  ;;  %v4657_v60 = vsel %vm52_vm4, %v54_v38, %v56_v58  ;;  %v4257_v38 = vld [vmem:[#allocation3 + $0x530] sm:$0xff]  }
 0x521   :  { %v1571_v1 = vpack.c.bf16 %v1570_v62, %v1569_v61  ;;  %v2030_v61 = vrot.slane %v4657_v60, 7  ;;  %v2065_v62 = vpack.c.bf16 %v4657_v60, %v4629_v46 }
 0x523   :  { %3940 = vmatmul.mubr.bf16.vlgmr.msra.gmra.mxu1 %v1571_v1 }
 0x524   :  { %3964 = vmatpush3.bf16.msra.mxu1 %v4237_v63  ;;  %3979 = vmatprep.mubr.msk.bf16.mxu1 %vm4356_vm8, %v4355_v0  ;;  %v2029_v63 = vrot.slane %v4629_v46, 7  ;;  %v4282_v46 = vld [vmem:[#allocation3 + $0x5f8] sm:$0xff]  }
 0x525   :  { %3965 = vmatprep.subr.bf16.mxu1 %v4355_v0 }
 0x526   :  { %v4669_v23 = vsel %vm109_vm3, %v2029_v63, %v2030_v61 }
 0x528   :  { %3966 = vmatpush3.bf16.msra.mxu1 %v4238_v2  ;;  %v4673_v2 = vsel %vm109_vm3, %v2028_v54, %v2029_v63  ;;  %v4275_v54 = vld [vmem:[#allocation3 + $0x500] sm:$0xff]   ;;  %v4290_v63 = vld [vmem:[#allocation3 + $0x648] sm:$0xff]  }
 0x529   :  { %3967 = vmatprep.subr.bf16.mxu1 %v4355_v0 }
 0x52c   :  { %3968 = vmatpush3.bf16.msra.mxu1 %v4239_v3  ;;  %v2046_v3 = vrot.slane %v4657_v60, 1  ;;  %v4287_v60 = vld [vmem:[#allocation3 + $0x650] sm:$0xff]  }
 0x52d   :  { %3969 = vmatprep.subr.bf16.mxu1 %v4355_v0 }
 0x530   :  { %3970 = vmatpush3.bf16.msra.mxu1 %v4240_v4  ;;  %v2064_v4 = vpack.c.bf16 %v4669_v23, %v4673_v2  ;;  %v4291_v23 = vld [vmem:[#allocation3 + $0x5e0] sm:$0xff]  }
 0x531   :  { %3971 = vmatprep.subr.bf16.mxu1 %v4355_v0  ;;  %v4293_v2 = vld [vmem:[#allocation3 + $0x640] sm:$0xff]  }
 0x534   :  { %3972 = vmatpush3.bf16.msra.mxu1 %v4241_v5 }
 0x535   :  { %3973 = vmatprep.subr.bf16.mxu1 %v4355_v0 }
 0x538   :  { %3974 = vmatpush3.bf16.msra.mxu1 %v4242_v6  ;;  %v2048_v6 = vrot.slane %v4588_v25, 1 }
 0x539   :  { %3975 = vmatprep.subr.bf16.mxu1 %v4355_v0 }
 0x53a   :  { %v2057_v12 = vsel %vm2049_vm5, %v2048_v6, %v2041_v44  ;;  %v4261_v44 = vld [vmem:[#allocation3 + $0x560] sm:$0xff]  }
 0x53c   :  { %3976 = vmatpush3.bf16.msra.mxu1 %v4243_v7 }
 0x53d   :  { %3977 = vmatprep.subr.bf16.mxu1 %v4355_v0 }
 0x540   :  { %3978 = vmatpush3.bf16.msra.mxu1 %v4244_v8  ;;  %v2052_v8 = vsel %vm2049_vm5, %v2045_v48, %v2046_v3  ;;  %v4266_v48 = vld [vmem:[#allocation3 + $0x518] sm:$0xff]  }
 0x541   :  { %3983 = vmatprep.subr.bf16.mxu1 %v4256_v13 }
 0x543   :  { %3980 = vmatmul.mubr.bf16.vlgmr.msra.gmra.mxu1 %v1571_v1  ;;  %v4665_v1 = vsel %vm52_vm4, %v56_v58, %v4584_v18 }
 0x544   :  { %3984 = vmatpush3.bf16.msra.mxu1 %v4256_v13  ;;  %3999 = vmatprep.mubr.bf16.mxu1 %v2060_v53  ;;  %v2047_v5 = vrot.slane %v4665_v1, 1  ;;  %v2031_v13 = vrot.slane %v4665_v1, 7  ;;  %v3491_v58 = vpack.c.bf16 %v4584_v18, %v4665_v1  ;;  %v4280_v18 = vld [vmem:[#allocation3 + $0x638] sm:$0xff]   ;;  %v4289_v1 = vld [vmem:[#allocation3 + $0x620] sm:$0xff]  }
 0x545   :  { %3985 = vmatprep.subr.bf16.mxu1 %v4259_v14 }
 0x546   :  { %v2051_v7 = vsel %vm2049_vm5, %v2046_v3, %v2047_v5  ;;  %v2050_v11 = vsel %vm2049_vm5, %v2047_v5, %v2048_v6  ;;  %v4292_v3 = vld [vmem:[#allocation3 + $0x618] sm:$0xff]   ;;  %v4295_v5 = vld [vmem:[#allocation3 + $0x610] sm:$0xff]  }
 0x547   :  { %v2066_v10 = vpack.c.bf16 %v2051_v7, %v2052_v8  ;;  %v4296_v6 = vld [vmem:[#allocation3 + $0x5d0] sm:$0xff]   ;;  %v4297_v7 = vld [vmem:[#allocation3 + $0x608] sm:$0xff]  }
 0x548   :  { %3986 = vmatpush3.bf16.msra.mxu1 %v4259_v14  ;;  %v2069_v14 = vpack.c.bf16 %v2057_v12, %v2050_v11  ;;  %v4298_v8 = vld [vmem:[#allocation3 + $0x5c8] sm:$0xff]   ;;  %v4300_v11 = vld [vmem:[#allocation3 + $0x5c0] sm:$0xff]   ;;  %v3441_v12 = vld [vmem:[%s4928_s2 + $0x57] ss:$0 sm:$0xff] }
 0x549   :  { %3987 = vmatprep.subr.bf16.mxu1 %v4262_v15 }
 0x54c   :  { %3988 = vmatpush3.bf16.msra.mxu1 %v4262_v15  ;;  %v4693_v15 = vsel %vm109_vm3, %v2031_v13, %v2032_v27  ;;  %v4254_v27 = vld [vmem:[#allocation3 + $0x538] sm:$0xff]  }
 0x54d   :  { %3989 = vmatprep.subr.bf16.mxu1 %v4265_v16 }
 0x550   :  { %3990 = vmatpush3.bf16.msra.mxu1 %v4265_v16  ;;  %v2034_v16 = vsel %vm109_vm3, %v2030_v61, %v2031_v13  ;;  %v4286_v61 = vld [vmem:[#allocation3 + $0x628] sm:$0xff]   ;;  %v3450_v13 = vld [vmem:[%s4928_s2 + $0x5b] ss:$0 sm:$0xff] }
 0x551   :  { %3991 = vmatprep.subr.bf16.mxu1 %v4268_v24 }
 0x554   :  { %3992 = vmatpush3.bf16.msra.mxu1 %v4268_v24  ;;  %v2067_v24 = vpack.c.bf16 %v4693_v15, %v2034_v16 }
 0x555   :  { %3993 = vmatprep.subr.bf16.mxu1 %v4271_v26 }
 0x558   :  { %3994 = vmatpush3.bf16.msra.mxu1 %v4271_v26  ;;  %v3432_v26 = vld [vmem:[%s4928_s2 + $0x53] ss:$0 sm:$0xff] }
 0x559   :  { %3995 = vmatprep.subr.bf16.mxu1 %v4274_v30 }
 0x55c   :  { %3996 = vmatpush3.bf16.msra.mxu1 %v4274_v30 }
 0x55d   :  { %3997 = vmatprep.subr.bf16.mxu1 %v4276_v43 }
 0x560   :  { %3998 = vmatpush3.bf16.msra.mxu1 %v4276_v43  ;;  %v4260_v43 = vld [vmem:[#allocation3 + $0x528] sm:$0xff]  }
 0x563   :  { %4000 = vmatmul.mubr.bf16.vlgmr.msra.gmra.mxu1 %v2063_v56  ;;  %v3488_v56 = vpack.c.bf16 %v4406_v20, %v4329_v55  ;;  %v4277_v20 = vld [vmem:[#allocation3 + $0x678] sm:$0xff]  }
 0x564   :  { %4003 = vmatprep.mubr.bf16.mxu1 %v2066_v10  ;;  %4007 = vmatprep.subr.bf16.mxu1 %v4277_v20  ;;  %v4299_v10 = vld [vmem:[#allocation3 + $0x600] sm:$0xff]  }
 0x565   :  { %4008 = vmatpush3.bf16.msra.mxu1 %v4277_v20 }
 0x566   :  { %4009 = vmatprep.subr.bf16.mxu1 %v4278_v40 }
 0x569   :  { %4010 = vmatpush3.bf16.msra.mxu1 %v4278_v40 }
 0x56a   :  { %4011 = vmatprep.subr.bf16.mxu1 %v4279_v41 }
 0x56b   :  { %4004 = vmatmul.mubr.bf16.gmra.mxu1 %v2069_v14 }
 0x56d   :  { %4012 = vmatpush3.bf16.msra.mxu1 %v4279_v41 }
 0x5e3   :  { %v1675_v29 = vpop.f32.mrf.mxu1 }
 0x5e4   :  { %v1676_v31 = vadd.f32 %v3432_v26, %v1675_v29 }
 0x5e5   :  { %v3941_v30 = vpop.f32.mrf.mxu1 }
 0x5e6   :  { %v1682_v34 = vmax.f32 %v1676_v31, 0.0 }
 0x5e7   :  { %v1678_v32 = vpop.f32.mrf.mxu1 }
 0x5e8   :  { %v1679_v33 = vadd.f32 %v3432_v26, %v1678_v32 }
 0x5e9   :  { %v3942_v25 = vpop.f32.mrf.mxu1 }
 0x5ea   :  { %v1683_v35 = vmax.f32 %v1679_v33, 0.0  ;;  %v1911_v33 = vld [vmem:[%s4928_s2] sm:$0xff] }
 0x5ec   :  { %v1684_v36 = vpack.c.bf16 %v1683_v35, %v1682_v34 }
 0x5ee   :  { %3960 = vmatmul.mubr.bf16.vlgmr.msra.gmra.mxu0 %v1684_v36 }
 0x5ef   :  { %3730 = vmatpush3.bf16.msra.mxu0 %v4254_v27  ;;  %3486 = vmatprep.mubr.msk.bf16.mxu0 %vm3484_vm6, %v3485_v39  ;;  %v4273_v39 = vld [vmem:[#allocation3 + $0x540] sm:$0xff]  }
 0x5f0   :  { %3731 = vmatprep.subr.bf16.mxu0 %v4255_v37  ;;  %v1912_v37 = vld [vmem:[%s4928_s2 + $0x8] sm:$0xff] }
 0x5f3   :  { %3732 = vmatpush3.bf16.msra.mxu0 %v4257_v38 }
 0x5f4   :  { %3733 = vmatprep.subr.bf16.mxu0 %v4258_v19 }
 0x5f7   :  { %3734 = vmatpush3.bf16.msra.mxu0 %v4260_v43 }
 0x5f8   :  { %3735 = vmatprep.subr.bf16.mxu0 %v4261_v44 }
 0x5fb   :  { %3736 = vmatpush3.bf16.msra.mxu0 %v4263_v45 }
 0x5fc   :  { %3737 = vmatprep.subr.bf16.mxu0 %v4264_v47 }
 0x5ff   :  { %3738 = vmatpush3.bf16.msra.mxu0 %v4266_v48 }
 0x600   :  { %3739 = vmatprep.subr.bf16.mxu0 %v4267_v49  ;;  %v4750_v49 = vld [vmem:[%s4928_s2 + $0x5c] ss:$0 sm:$0xff] }
 0x603   :  { %v4706_v28 = vpop.f32.mrf.mxu1  ;;  %3740 = vmatpush3.bf16.msra.mxu0 %v4269_v50 }
 0x604   :  { %3741 = vmatprep.subr.bf16.mxu0 %v4270_v51 }
 0x605   :  { %v3981_v52 = vpop.f32.mrf.mxu1 }
 0x607   :  { %v4708_v53 = vpop.f32.mrf.mxu1  ;;  %3742 = vmatpush3.bf16.msra.mxu0 %v4272_v22 }
 0x608   :  { %3743 = vmatprep.subr.bf16.mxu0 %v4273_v39  ;;  %v1904_v25 = vadd.f32 %v3450_v13, %v4708_v53 }
 0x609   :  { %v3982_v21 = vpop.f32.mrf.mxu1 }
 0x60b   :  { %3744 = vmatpush3.bf16.msra.mxu0 %v4275_v54 }
 0x60c   :  { %3781 = vmatprep.subr.bf16.mxu0 %v4280_v18 }
 0x60e   :  { %2300 = vmatmul.mubr.bf16.vlgmr.msra.gmra.mxu0 %v2058_v42  ;;  %v4281_v42 = vld [vmem:[#allocation3 + $0x660] sm:$0xff]  }
 0x60f   :  { %3489 = vmatprep.mubr.msk.bf16.mxu0 %vm3487_vm7, %v3488_v56  ;;  %4013 = vmatprep.subr.bf16.mxu1 %v4281_v42  ;;  %v1916_v56 = vadd.s32 24, %v4387_v9 }
 0x610   :  { %4014 = vmatpush3.bf16.msra.mxu1 %v4281_v42  ;;  %3782 = vmatpush3.bf16.msra.mxu0 %v4282_v46 }
 0x611   :  { %4015 = vmatprep.subr.bf16.mxu1 %v4284_v17  ;;  %3783 = vmatprep.subr.bf16.mxu0 %v4283_v57 }
 0x614   :  { %4016 = vmatpush3.bf16.msra.mxu1 %v4284_v17  ;;  %v1946_v17 = vand.u32 31, %v1916_v56 }
 0x615   :  { %4017 = vmatprep.subr.bf16.mxu1 %v4287_v60 }
 0x616   :  { %2308 = vmatmul.mubr.bf16.gmra.mxu0 %v2061_v59  ;;  %v4285_v59 = vld [vmem:[#allocation3 + $0x5f0] sm:$0xff]   ;;  %vm4766_vm0 = vcmp.lt.s32.totalorder %v1946_v17, 28 }
 0x617   :  { %2315 = vmatprep.mubr.bf16.mxu0 %v2065_v62  ;;  %3784 = vmatpush3.bf16.msra.mxu0 %v4285_v59  ;;  %v4288_v62 = vld [vmem:[#allocation3 + $0x5e8] sm:$0xff]  }
 0x618   :  { %3785 = vmatprep.subr.bf16.mxu0 %v4286_v61  ;;  %4018 = vmatpush3.bf16.msra.mxu1 %v4287_v60 }
 0x619   :  { %4019 = vmatprep.subr.bf16.mxu1 %v4290_v63 }
 0x61b   :  { %3786 = vmatpush3.bf16.msra.mxu0 %v4288_v62 }
 0x61c   :  { %3787 = vmatprep.subr.bf16.mxu0 %v4289_v1  ;;  %4020 = vmatpush3.bf16.msra.mxu1 %v4290_v63 }
 0x61d   :  { %4021 = vmatprep.subr.bf16.mxu1 %v4293_v2 }
 0x61e   :  { %2316 = vmatmul.mubr.bf16.gmra.mxu0 %v2064_v4  ;;  %v4294_v4 = vld [vmem:[#allocation3 + $0x5d8] sm:$0xff]  }
 0x61f   :  { %3492 = vmatprep.mubr.msk.bf16.mxu0 %vm3490_vm10, %v3491_v58  ;;  %3788 = vmatpush3.bf16.msra.mxu0 %v4291_v23 }
 0x620   :  { %3789 = vmatprep.subr.bf16.mxu0 %v4292_v3  ;;  %4022 = vmatpush3.bf16.msra.mxu1 %v4293_v2 }
 0x621   :  { %4051 = vmatprep.subr.bf16.mxu1 %v4355_v0 }
 0x623   :  { %3790 = vmatpush3.bf16.msra.mxu0 %v4294_v4  ;;  %v4001_v43 = vpop.f32.mrf.mxu1 }
 0x624   :  { %3791 = vmatprep.subr.bf16.mxu0 %v4295_v5 }
 0x625   :  { %v2366_v45 = vpop.f32.mrf.mxu1 }
 0x626   :  { %2324 = vmatmul.mubr.bf16.gmra.mxu0 %v2067_v24  ;;  %v1901_v24 = vadd.f32 %v3450_v13, %v4706_v28 }
 0x627   :  { %3792 = vmatpush3.bf16.msra.mxu0 %v4296_v6  ;;  %v4002_v51 = vpop.f32.mrf.mxu1 }
 0x628   :  { %3793 = vmatprep.subr.bf16.mxu0 %v4297_v7 }
 0x629   :  { %v2369_v53 = vpop.f32.mrf.mxu1 }
 0x62b   :  { %3794 = vmatpush3.bf16.msra.mxu0 %v4298_v8  ;;  %v4005_v41 = vpop.f32.mrf.mxu1 }
 0x62c   :  { %3795 = vmatprep.subr.bf16.mxu0 %v4299_v10 }
 0x62d   :  { %v2382_v63 = vpop.f32.mrf.mxu1 }
 0x62f   :  { %3796 = vmatpush3.bf16.msra.mxu0 %v4300_v11  ;;  %v4006_v11 = vpop.f32.mrf.mxu1 }
 0x630   :  { %4031 = vmatprep.subr.bf16.mxu0 %v4355_v0 }
 0x6ae   :  { %v1788_v14 = vpop.f32.mrf.mxu0 }
 0x6af   :  { %v1789_v15 = vadd.f32 %v3441_v12, %v1788_v14 }
 0x6b0   :  { %v3961_v16 = vpop.f32.mrf.mxu0 }
 0x6b1   :  { %v1795_v26 = vmax.f32 %v1789_v15, 0.0 }
 0x6b2   :  { %v1791_v29 = vpop.f32.mrf.mxu0 }
 0x6b3   :  { %v1792_v30 = vadd.f32 %v3441_v12, %v1791_v29  ;;  %v1907_v31 = vadd.f32 %v1901_v24, %v1795_v26 }
 0x6b4   :  { %v3962_v32 = vpop.f32.mrf.mxu0 }
 0x6b5   :  { %v1796_v34 = vmax.f32 %v1792_v30, 0.0  ;;  %v1909_v35 = vmax.f32 %v1907_v31, 0.0  ;;  %v2385_v32 = vpop.f32.mrf.mxu1 }
 0x6b7   :  { %v1913_v27 = vmul.f32 %v1911_v33, %v1909_v35  ;;  %v1908_v36 = vadd.f32 %v1904_v25, %v1796_v34 }
 0x6b9   :  { %3216 = vadd.xlane.f32.xlu0 %v1913_v27  ;;  %v1910_v38 = vmax.f32 %v1908_v36, 0.0  ;;  %v1920_v27 = vadd.s32 56, %v4387_v9 }
 0x6bb   :  { %v1914_v19 = vmul.f32 %v1912_v37, %v1910_v38 }
 0x6bd   :  { %3242 = vadd.xlane.f32.xlu1 %v1914_v19 }
 0x6ce   :  { %v3745_v44 = vpop.f32.mrf.mxu0 }
 0x6d0   :  { %v3746_v47 = vpop.f32.mrf.mxu0 }
 0x6d1   :  { %v3747_v48 = vadd.f32 %v3746_v47, %v3745_v44 }
 0x6d2   :  { %v3748_v50 = vpop.f32.mrf.mxu0 }
 0x6d3   :  { %v2302_v22 = vadd.f32 %v3747_v48, %v4750_v49  ;;  %v1974_v48 = vand.u32 31, %v1920_v27  ;;  %v4303_v27 = vld [vmem:[#allocation3 + $0x6e8] sm:$0xff]  }
 0x6d4   :  { %v3749_v28 = vpop.f32.mrf.mxu0 }
 0x6d5   :  { %v3750_v39 = vadd.f32 %v3749_v28, %v3748_v50  ;;  %v2367_v21 = vadd.f32 %v2366_v45, %v2302_v22  ;;  %vm4790_vm11 = vcmp.lt.s32.totalorder %v1974_v48, 28 }
 0x6d6   :  { %v3751_v52 = vpop.f32.mrf.mxu0 }
 0x6d7   :  { %v2305_v54 = vadd.f32 %v3750_v39, %v4750_v49  ;;  %v4758_v46 = vmax.f32 %v2367_v21, 0.0 }
 0x6d8   :  { %v3752_v55 = vpop.f32.mrf.mxu0 }
 0x6d9   :  { %v3753_v58 = vadd.f32 %v3752_v55, %v3751_v52  ;;  %v2370_v20 = vadd.f32 %v2369_v53, %v2305_v54  ;;  %v2445_v5 = vrot.slane %v4758_v46, 1  ;;  %v4310_v54 = vld [vmem:[#allocation3 + $0x730] sm:$0xff]  }
 0x6da   :  { %v3754_v40 = vpop.f32.mrf.mxu0 }
 0x6db   :  { %v2310_v42 = vadd.f32 %v3753_v58, %v4750_v49  ;;  %v4756_v18 = vmax.f32 %v2370_v20, 0.0 }
 0x6dc   :  { %v3755_v57 = vpop.f32.mrf.mxu0 }
 0x6dd   :  { %v2375_v59 = vadd.f32 %v4001_v43, %v2310_v42  ;;  %v3756_v60 = vadd.f32 %v3755_v57, %v3754_v40  ;;  %v2462_v62 = vpack.c.bf16 %v4756_v18, %v4758_v46  ;;  %v2446_v23 = vrot.slane %v4756_v18, 1 }
 0x6de   :  { %v3757_v61 = vpop.f32.mrf.mxu0  ;;  %v2430_v40 = vrot.slane %v4756_v18, 7 }
 0x6df   :  { %v4762_v1 = vmax.f32 %v2375_v59, 0.0  ;;  %v2313_v2 = vadd.f32 %v3756_v60, %v4750_v49  ;;  %2702 = vmatprep.mubr.bf16.mxu0 %v2462_v62  ;;  %v2459_v15 = vsel %vm2049_vm5, %v2445_v5, %v2446_v23 }
 0x6e0   :  { %v3758_v4 = vpop.f32.mrf.mxu0 }
 0x6e1   :  { %v2378_v6 = vadd.f32 %v4002_v51, %v2313_v2  ;;  %v3759_v7 = vadd.f32 %v3758_v4, %v3757_v61  ;;  %v2447_v8 = vrot.slane %v4762_v1, 1  ;;  %v2431_v2 = vrot.slane %v4762_v1, 7 }
 0x6e2   :  { %v3760_v10 = vpop.f32.mrf.mxu0 }
 0x6e3   :  { %v2416_v12 = vsel %vm4766_vm0, %v2378_v6, 0.0  ;;  %v2318_v13 = vadd.f32 %v3759_v7, %v4750_v49  ;;  %v2458_v14 = vsel %vm2049_vm5, %v2446_v23, %v2447_v8 }
 0x6e4   :  { %v4779_v16 = vmax.f32 %v2416_v12, 0.0  ;;  %v3761_v24 = vpop.f32.mrf.mxu0  ;;  %v2463_v26 = vpack.c.bf16 %v2458_v14, %v2459_v15 }
 0x6e5   :  { %v3762_v29 = vadd.f32 %v3761_v24, %v3760_v10  ;;  %v2383_v30 = vadd.f32 %v2382_v63, %v2318_v13 }
 0x6e6   :  { %v3763_v31 = vpop.f32.mrf.mxu0  ;;  %4023 = vmatprep.mubr.bf16.mxu1 %v2463_v26  ;;  %v2448_v33 = vrot.slane %v4779_v16, 1  ;;  %v2432_v23 = vrot.slane %v4779_v16, 7 }
 0x6e7   :  { %v2425_v25 = vmax.f32 %v2383_v30, 0.0  ;;  %v2321_v34 = vadd.f32 %v3762_v29, %v4750_v49 }
 0x6e8   :  { %v3764_v35 = vpop.f32.mrf.mxu0  ;;  %v2457_v47 = vsel %vm2049_vm5, %v2447_v8, %v2448_v33  ;;  %v2441_v4 = vsel %vm109_vm3, %v2431_v2, %v2432_v23 }
 0x6e9   :  { %v2449_v36 = vrot.slane %v2425_v25, 1  ;;  %v3765_v37 = vadd.f32 %v3764_v35, %v3763_v31  ;;  %v2386_v38 = vadd.f32 %v2385_v32, %v2321_v34  ;;  %v2433_v10 = vrot.slane %v2425_v25, 7  ;;  %v4301_v34 = vld [vmem:[#allocation3 + $0x6f8] sm:$0xff]   ;;  %v4302_v35 = vld [vmem:[#allocation3 + $0x6f0] sm:$0xff]  }
 0x6ea   :  { %v3766_v19 = vpop.f32.mrf.mxu0 }
 0x6eb   :  { %v2456_v43 = vsel %vm2049_vm5, %v2448_v33, %v2449_v36  ;;  %v2326_v44 = vadd.f32 %v3765_v37, %v4750_v49  ;;  %v2426_v45 = vmax.f32 %v2386_v38, 0.0  ;;  %v4305_v37 = vld [vmem:[#allocation3 + $0x6d8] sm:$0xff]   ;;  %v4306_v38 = vld [vmem:[#allocation3 + $0x6d0] sm:$0xff]  }
 0x6ec   :  { %v3767_v50 = vpop.f32.mrf.mxu0  ;;  %v2466_v51 = vpack.c.bf16 %v2456_v43, %v2457_v47  ;;  %v4308_v43 = vld [vmem:[#allocation3 + $0x6c0] sm:$0xff]  }
 0x6ed   :  { %v2391_v28 = vadd.f32 %v4005_v41, %v2326_v44  ;;  %v3768_v22 = vadd.f32 %v3767_v50, %v3766_v19  ;;  %v2450_v52 = vrot.slane %v2426_v45, 1  ;;  %v2434_v7 = vrot.slane %v2426_v45, 7  ;;  %v4307_v19 = vld [vmem:[#allocation3 + $0x6c8] sm:$0xff]  }
 0x6ee   :  { %4024 = vmatmul.mubr.bf16.vlgmr.msra.gmra.mxu1 %v2466_v51  ;;  %v2468_v8 = vpack.c.bf16 %v2426_v45, %v2425_v25 }
 0x6ef   :  { %v2427_v39 = vmax.f32 %v2391_v28, 0.0  ;;  %v2329_v53 = vadd.f32 %v3768_v22, %v4750_v49  ;;  %v2455_v20 = vsel %vm2049_vm5, %v2449_v36, %v2450_v52  ;;  %v2429_v49 = vrot.slane %v4758_v46, 7  ;;  %v4304_v36 = vld [vmem:[#allocation3 + $0x6e0] sm:$0xff]  }
 0x6f0   :  { %v2465_v46 = vpack.c.bf16 %v4779_v16, %v4762_v1  ;;  %v2440_v1 = vsel %vm109_vm3, %v2432_v23, %v2433_v10 }
 0x6f1   :  { %v2394_v21 = vadd.f32 %v4006_v11, %v2329_v53  ;;  %v2451_v55 = vrot.slane %v2427_v39, 1  ;;  %v2443_v59 = vsel %vm109_vm3, %v2429_v49, %v2430_v40  ;;  %v2439_v11 = vsel %vm109_vm3, %v2433_v10, %v2434_v7 }
 0x6f2   :  { %v2467_v12 = vpack.c.bf16 %v2439_v11, %v2440_v1  ;;  %v2435_v14 = vrot.slane %v2427_v39, 7 }
 0x6f3   :  { %v2420_v56 = vsel %vm4790_vm11, %v2394_v21, 0.0  ;;  %v2454_v58 = vsel %vm2049_vm5, %v2450_v52, %v2451_v55 }
 0x6f4   :  { %v2428_v41 = vmax.f32 %v2420_v56, 0.0  ;;  %v2469_v42 = vpack.c.bf16 %v2454_v58, %v2455_v20  ;;  %v2438_v16 = vsel %vm109_vm3, %v2434_v7, %v2435_v14  ;;  %v3493_v56 = vld [vmem:[%s4928_s2 + $0x5d] ss:$0 sm:$0xff] }
 0x6f6   :  { %v2436_v17 = vrot.slane %v2428_v41, 7  ;;  %4027 = vmatprep.mubr.bf16.mxu1 %v2469_v42  ;;  %v2452_v57 = vrot.slane %v2428_v41, 1  ;;  %v2471_v13 = vpack.c.bf16 %v2428_v41, %v2427_v39 }
 0x6f8   :  { %v2444_v60 = vsel %vm109_vm3, %v2436_v17, %v2429_v49  ;;  %v2453_v61 = vsel %vm2049_vm5, %v2451_v55, %v2452_v57  ;;  %v2460_v62 = vsel %vm2049_vm5, %v2452_v57, %v2445_v5  ;;  %v2442_v5 = vsel %vm109_vm3, %v2430_v40, %v2431_v2 }
 0x6f9   :  { %v2461_v18 = vpack.c.bf16 %v2443_v59, %v2444_v60  ;;  %v2472_v63 = vpack.c.bf16 %v2460_v62, %v2453_v61  ;;  %v2464_v6 = vpack.c.bf16 %v2441_v4, %v2442_v5  ;;  %v2437_v15 = vsel %vm109_vm3, %v2435_v14, %v2436_v17 }
 0x6fa   :  { %v2470_v24 = vpack.c.bf16 %v2437_v15, %v2438_v16  ;;  %vm3264_vm3 = vcmp.eq.s32.totalorder %v4387_v9, 1 }
 0x6fb   :  { %2703 = vmatmul.mubr.bf16.vlgmr.msra.gmra.mxu0 %v2461_v18  ;;  %4028 = vmatmul.mubr.bf16.gmra.mxu1 %v2472_v63 }
 0x6fc   :  { %2710 = vmatprep.mubr.bf16.mxu0 %v2465_v46  ;;  %4067 = vmatprep.mubr.msk.bf16.mxu1 %vm4356_vm8, %v4355_v0 }
 0x6fd   :  { %4032 = vmatpush3.bf16.msra.mxu0 %v4301_v34 }
 0x6fe   :  { %4033 = vmatprep.subr.bf16.mxu0 %v4355_v0 }
 0x701   :  { %4034 = vmatpush3.bf16.msra.mxu0 %v4302_v35 }
 0x702   :  { %4035 = vmatprep.subr.bf16.mxu0 %v4355_v0 }
 0x703   :  { %2711 = vmatmul.mubr.bf16.gmra.mxu0 %v2464_v6 }
 0x704   :  { %2718 = vmatprep.mubr.bf16.mxu0 %v2468_v8 }
 0x705   :  { %4036 = vmatpush3.bf16.msra.mxu0 %v4303_v27 }
 0x706   :  { %4037 = vmatprep.subr.bf16.mxu0 %v4355_v0 }
 0x709   :  { %4038 = vmatpush3.bf16.msra.mxu0 %v4304_v36 }
 0x70a   :  { %4039 = vmatprep.subr.bf16.mxu0 %v4355_v0 }
 0x70b   :  { %2719 = vmatmul.mubr.bf16.gmra.mxu0 %v2467_v12 }
 0x70c   :  { %2726 = vmatprep.mubr.bf16.mxu0 %v2471_v13 }
 0x70d   :  { %4040 = vmatpush3.bf16.msra.mxu0 %v4305_v37 }
 0x70e   :  { %4041 = vmatprep.subr.bf16.mxu0 %v4355_v0 }
 0x711   :  { %4042 = vmatpush3.bf16.msra.mxu0 %v4306_v38 }
 0x712   :  { %4043 = vmatprep.subr.bf16.mxu0 %v4355_v0 }
 0x713   :  { %2727 = vmatmul.mubr.bf16.gmra.mxu0 %v2470_v24 }
 0x714   :  { %4047 = vmatprep.mubr.msk.bf16.mxu0 %vm4356_vm8, %v4355_v0  ;;  %vm3272_vm8 = vcmask 1024  }
 0x715   :  { %4044 = vmatpush3.bf16.msra.mxu0 %v4307_v19 }
 0x716   :  { %4045 = vmatprep.subr.bf16.mxu0 %v4355_v0 }
 0x719   :  { %4046 = vmatpush3.bf16.msra.mxu0 %v4308_v43 }
 0x742   :  { %v3217_v26 = vpop.xlane.xlu0 %3216 }
 0x743   :  { %v3218_v29 = vrot.slane %v3217_v26, 4 }
 0x745   :  { %v3219_v30 = vadd.f32 %v3218_v29, %v3217_v26 }
 0x747   :  { %v3220_v31 = vrot.slane %v3219_v30, 2 }
 0x749   :  { %v3221_v32 = vadd.f32 %v3220_v31, %v3219_v30 }
 0x74b   :  { %v3222_v33 = vrot.slane %v3221_v32, 1 }
 0x74d   :  { %v3223_v25 = vadd.f32 %v3222_v33, %v3221_v32 }
 0x74f   :  { %4095 = vpush %v3223_v25 }
 0x7ae   :  { %v4025_v47 = vpop.f32.mrf.mxu1 }
 0x7b0   :  { %v2769_v51 = vpop.f32.mrf.mxu1 }
 0x7b2   :  { %v4026_v52 = vpop.f32.mrf.mxu1 }
 0x7b4   :  { %v2772_v40 = vpop.f32.mrf.mxu1 }
 0x7bb   :  { %v3797_v44 = vpop.f32.mrf.mxu0  ;;  %v4029_v57 = vpop.f32.mrf.mxu1 }
 0x7bd   :  { %v3798_v45 = vpop.f32.mrf.mxu0  ;;  %v2785_v23 = vpop.f32.mrf.mxu1 }
 0x7be   :  { %v3799_v53 = vadd.f32 %v3798_v45, %v3797_v44 }
 0x7bf   :  { %v3800_v48 = vpop.f32.mrf.mxu0  ;;  %v4030_v11 = vpop.f32.mrf.mxu1 }
 0x7c0   :  { %v2705_v42 = vadd.f32 %v3799_v53, %v3493_v56  ;;  %v4309_v53 = vld [vmem:[#allocation3 + $0x738] sm:$0xff]  }
 0x7c1   :  { %v3801_v50 = vpop.f32.mrf.mxu0  ;;  %v2788_v24 = vpop.f32.mrf.mxu1  ;;  %4052 = vmatpush3.bf16.msra.mxu1 %v4309_v53 }
 0x7c2   :  { %v3802_v22 = vadd.f32 %v3801_v50, %v3800_v48  ;;  %v4842_v18 = vadd.f32 %v2769_v51, %v2705_v42  ;;  %4053 = vmatprep.subr.bf16.mxu1 %v4355_v0  ;;  %v4318_v42 = vld [vmem:[#allocation3 + $0x6b0] sm:$0xff]  }
 0x7c3   :  { %v3803_v28 = vpop.f32.mrf.mxu0 }
 0x7c4   :  { %v2708_v58 = vadd.f32 %v3802_v22, %v3493_v56 }
 0x7c5   :  { %v3804_v39 = vpop.f32.mrf.mxu0  ;;  %4054 = vmatpush3.bf16.msra.mxu1 %v4310_v54 }
 0x7c6   :  { %v3805_v21 = vadd.f32 %v3804_v39, %v3803_v28  ;;  %v4840_v60 = vadd.f32 %v2772_v40, %v2708_v58  ;;  %4055 = vmatprep.subr.bf16.mxu1 %v4355_v0  ;;  %v4314_v58 = vld [vmem:[#allocation3 + $0x710] sm:$0xff]   ;;  %v4316_v40 = vld [vmem:[#allocation3 + $0x700] sm:$0xff]  }
 0x7c7   :  { %v3806_v55 = vpop.f32.mrf.mxu0 }
 0x7c8   :  { %v2713_v49 = vadd.f32 %v3805_v21, %v3493_v56  ;;  %v2808_v2 = vadd.f32 %v4840_v60, %v4842_v18  ;;  %v4311_v21 = vld [vmem:[#allocation3 + $0x728] sm:$0xff]  }
 0x7c9   :  { %v3807_v20 = vpop.f32.mrf.mxu0  ;;  %4056 = vmatpush3.bf16.msra.mxu1 %v4311_v21 }
 0x7ca   :  { %v3808_v41 = vadd.f32 %v3807_v20, %v3806_v55  ;;  %v4844_v63 = vadd.f32 %v4025_v47, %v2713_v49  ;;  %4057 = vmatprep.subr.bf16.mxu1 %v4355_v0  ;;  %v4312_v55 = vld [vmem:[#allocation3 + $0x720] sm:$0xff]   ;;  %v4315_v20 = vld [vmem:[#allocation3 + $0x708] sm:$0xff]  }
 0x7cb   :  { %v3809_v17 = vpop.f32.mrf.mxu0  ;;  %v4319_v49 = vld [vmem:[#allocation3 + $0x6a8] sm:$0xff]  }
 0x7cc   :  { %v2716_v59 = vadd.f32 %v3808_v41, %v3493_v56  ;;  %v2809_v7 = vadd.f32 %v2808_v2, %v4844_v63  ;;  %v4317_v41 = vld [vmem:[#allocation3 + $0x6b8] sm:$0xff]  }
 0x7cd   :  { %v3810_v61 = vpop.f32.mrf.mxu0  ;;  %4058 = vmatpush3.bf16.msra.mxu1 %v4312_v55  ;;  %4071 = vmatprep.subr.bf16.mxu0 %v4317_v41 }
 0x7ce   :  { %v2781_v62 = vadd.f32 %v4026_v52, %v2716_v59  ;;  %v3811_v8 = vadd.f32 %v3810_v61, %v3809_v17  ;;  %4059 = vmatprep.subr.bf16.mxu1 %v4355_v0  ;;  %v4320_v17 = vld [vmem:[#allocation3 + $0x6a0] sm:$0xff]   ;;  %v4322_v59 = vld [vmem:[#allocation3 + $0x690] sm:$0xff]  }
 0x7cf   :  { %v3812_v46 = vpop.f32.mrf.mxu0 }
 0x7d0   :  { %v4850_v5 = vsel %vm4766_vm0, %v2781_v62, 0.0  ;;  %v2721_v15 = vadd.f32 %v3811_v8, %v3493_v56  ;;  %v4323_v8 = vld [vmem:[#allocation3 + $0x688] sm:$0xff]  }
 0x7d1   :  { %v3813_v4 = vpop.f32.mrf.mxu0  ;;  %v2810_v1 = vadd.f32 %v2809_v7, %v4850_v5 }
 0x7d2   :  { %v3814_v6 = vadd.f32 %v3813_v4, %v3812_v46  ;;  %v4856_v32 = vadd.f32 %v2785_v23, %v2721_v15  ;;  %v3053_v15 = vmul.f32 %v4844_v63, %v4844_v63 }
 0x7d3   :  { %v3815_v10 = vpop.f32.mrf.mxu0  ;;  %v2811_v29 = vrot.slane %v2810_v1, 4 }
 0x7d4   :  { %v2724_v12 = vadd.f32 %v3814_v6, %v3493_v56 }
 0x7d5   :  { %v3816_v13 = vpop.f32.mrf.mxu0  ;;  %v2812_v34 = vadd.f32 %v2811_v29, %v2810_v1  ;;  %v3049_v1 = vsub.s32 1, %v4387_v9  ;;  %v3055_v29 = vmul.f32 %v4856_v32, %v4856_v32 }
 0x7d6   :  { %v3817_v14 = vadd.f32 %v3816_v13, %v3815_v10  ;;  %v4854_v30 = vadd.f32 %v2788_v24, %v2724_v12  ;;  %v4324_v10 = vld [vmem:[#allocation3 + $0x680] sm:$0xff]   ;;  %v3051_v12 = vmul.f32 %v4842_v18, %v4842_v18  ;;  %v3052_v13 = vmul.f32 %v4840_v60, %v4840_v60 }
 0x7d7   :  { %v3818_v16 = vpop.f32.mrf.mxu0  ;;  %v2813_v38 = vrot.slane %v2812_v34, 2 }
 0x7d8   :  { %v2729_v26 = vadd.f32 %v3817_v14, %v3493_v56  ;;  %v2817_v35 = vadd.f32 %v4854_v30, %v4856_v32 }
 0x7d9   :  { %v3819_v3 = vpop.f32.mrf.mxu0  ;;  %v2814_v44 = vadd.f32 %v2813_v38, %v2812_v34 }
 0x7da   :  { %v3820_v31 = vadd.f32 %v3819_v3, %v3818_v16  ;;  %v4858_v33 = vadd.f32 %v4029_v57, %v2729_v26  ;;  %v4321_v57 = vld [vmem:[#allocation3 + $0x698] sm:$0xff]   ;;  %v3054_v16 = vmul.f32 %v4850_v5, %v4850_v5  ;;  %v3056_v3 = vmul.f32 %v4854_v30, %v4854_v30 }
 0x7db   :  { %v2815_v48 = vrot.slane %v2814_v44, 1 }
 0x7dc   :  { %v2732_v25 = vadd.f32 %v3820_v31, %v3493_v56  ;;  %v2818_v36 = vadd.f32 %v2817_v35, %v4858_v33  ;;  %v4313_v56 = vld [vmem:[#allocation3 + $0x718] sm:$0xff]   ;;  %v3057_v18 = vmul.f32 %v4858_v33, %v4858_v33 }
 0x7dd   :  { %v2816_v28 = vadd.f32 %v2815_v48, %v2814_v44  ;;  %4060 = vmatpush3.bf16.msra.mxu1 %v4313_v56 }
 0x7de   :  { %v2797_v27 = vadd.f32 %v4030_v11, %v2732_v25  ;;  %4061 = vmatprep.subr.bf16.mxu1 %v4355_v0  ;;  %v3045_v11 = vsub.s32 0, %v4387_v9 }
 0x7e0   :  { %v4865_v37 = vsel %vm4790_vm11, %v2797_v27, 0.0 }
 0x7e1   :  { %v2819_v19 = vadd.f32 %v2818_v36, %v4865_v37  ;;  %4062 = vmatpush3.bf16.msra.mxu1 %v4314_v58  ;;  %v3058_v60 = vmul.f32 %v4865_v37, %v4865_v37 }
 0x7e2   :  { %4063 = vmatprep.subr.bf16.mxu1 %v4355_v0 }
 0x7e3   :  { %v2820_v43 = vrot.slane %v2819_v19, 4 }
 0x7e5   :  { %v2821_v45 = vadd.f32 %v2820_v43, %v2819_v19  ;;  %4064 = vmatpush3.bf16.msra.mxu1 %v4315_v20  ;;  %v3204_v20 = vld [vmem:[%s4928_s2 + $0x30] sm:$0xff] }
 0x7e6   :  { %4065 = vmatprep.subr.bf16.mxu1 %v4355_v0 }
 0x7e7   :  { %v2822_v47 = vrot.slane %v2821_v45, 2 }
 0x7e9   :  { %v2823_v50 = vadd.f32 %v2822_v47, %v2821_v45  ;;  %4066 = vmatpush3.bf16.msra.mxu1 %v4316_v40  ;;  %v3200_v47 = vld [vmem:[%s4928_s2 + $0x10] sm:$0xff] }
 0x7eb   :  { %v2824_v51 = vrot.slane %v2823_v50, 1 }
 0x7ed   :  { %v2825_v22 = vadd.f32 %v2824_v51, %v2823_v50  ;;  %v3201_v50 = vld [vmem:[%s4928_s2 + $0x18] sm:$0xff]  ;;  %v3202_v51 = vld [vmem:[%s4928_s2 + $0x20] sm:$0xff] }
 0x7ef   :  { %v2826_v39 = vsel %vm67_vm1, %v2816_v28, %v2825_v22  ;;  %vm3238_vm1 = vcmp.eq.s32.totalorder %v4387_v9, 0 }
 0x7f0   :  { %v2827_v52 = vpack.c.bf16 %v2826_v39, %v2826_v39 }
 0x7f2   :  { %4048 = vmatmul.mubr.bf16.vlgmr.msra.gmra.mxu0 %v2827_v52  ;;  %v3203_v52 = vld [vmem:[%s4928_s2 + $0x28] sm:$0xff] }
 0x7f3   :  { %4072 = vmatpush3.bf16.msra.mxu0 %v4317_v41  ;;  %v3205_v41 = vld [vmem:[%s4928_s2 + $0x38] sm:$0xff] }
 0x7f4   :  { %4073 = vmatprep.subr.bf16.mxu0 %v4318_v42 }
 0x7f7   :  { %4074 = vmatpush3.bf16.msra.mxu0 %v4318_v42 }
 0x7f8   :  { %4075 = vmatprep.subr.bf16.mxu0 %v4319_v49 }
 0x7fb   :  { %4076 = vmatpush3.bf16.msra.mxu0 %v4319_v49  ;;  %v3206_v49 = vld [vmem:[%s4928_s2 + $0x40] sm:$0xff] }
 0x7fc   :  { %4077 = vmatprep.subr.bf16.mxu0 %v4320_v17 }
 0x7ff   :  { %4078 = vmatpush3.bf16.msra.mxu0 %v4320_v17 }
 0x800   :  { %4079 = vmatprep.subr.bf16.mxu0 %v4321_v57 }
 0x803   :  { %4080 = vmatpush3.bf16.msra.mxu0 %v4321_v57 }
 0x804   :  { %4081 = vmatprep.subr.bf16.mxu0 %v4322_v59 }
 0x807   :  { %4082 = vmatpush3.bf16.msra.mxu0 %v4322_v59 }
 0x808   :  { %4083 = vmatprep.subr.bf16.mxu0 %v4323_v8 }
 0x80b   :  { %4084 = vmatpush3.bf16.msra.mxu0 %v4323_v8 }
 0x80c   :  { %4085 = vmatprep.subr.bf16.mxu0 %v4324_v10 }
 0x80f   :  { %4086 = vmatpush3.bf16.msra.mxu0 %v4324_v10 }
 0x8b2   :  { %v2926_v0 = vpop.f32.mrf.mxu0 }
 0x8b3   :  { %v3526_v61 = vmul.f32 -1.442695, %v2926_v0  ;;  %v3207_v0 = vld [vmem:[%s4928_s2 + $0x48] sm:$0xff]  ;;  %s4096_s2 = spop %4095 }
 0x8b4   :  { %v4049_v62 = vpop.f32.mrf.mxu0 }
 0x8b5   :  { %4325 = vpow2.f32 %v3526_v61 }
 0x8b6   :  { %v2929_v46 = vpop.f32.mrf.mxu0 }
 0x8b8   :  { %v4050_v23 = vpop.f32.mrf.mxu0 }
 0x8c2   :  { %v4326_v2 = vpop.eup %4325 }
 0x8c3   :  { %v2935_v4 = vadd.f32 1.0, %v4326_v2 }
 0x8c5   :  { %4327 = vrcp.f32 %v2935_v4  ;;  %v3243_v4 = vpop.xlane.xlu1 %3242 }
 0x8d2   :  { %v4328_v6 = vpop.eup %4327 }
 0x8d3   :  { %v2938_v7 = vpack.c.bf16 %v4328_v6, %v4328_v6  ;;  %v3244_v6 = vrot.slane %v3243_v4, 4 }
 0x8d5   :  { %4068 = vmatmul.mubr.bf16.vlgmr.msra.gmra.mxu1 %v2938_v7  ;;  %v3245_v7 = vadd.f32 %v3244_v6, %v3243_v4 }
 0x8d7   :  { %v3246_v8 = vrot.slane %v3245_v7, 2 }
 0x995   :  { %v3037_v14 = vpop.f32.mrf.mxu1 }
 0x996   :  { %v3046_v24 = vrot.slane %v3037_v14, %v3045_v11  ;;  %v3050_v26 = vrot.slane %v3037_v14, %v3049_v1 }
 0x997   :  { %v4069_v31 = vpop.f32.mrf.mxu1 }
 0x998   :  { %v3059_v25 = vmul.f32 %v3051_v12, %v3046_v24  ;;  %v3060_v63 = vmul.f32 %v3052_v13, %v3046_v24  ;;  %v3061_v34 = vmul.f32 %v3053_v15, %v3046_v24  ;;  %v3062_v35 = vmul.f32 %v3054_v16, %v3046_v24 }
 0x999   :  { %v3040_v5 = vpop.f32.mrf.mxu1  ;;  %v3063_v27 = vmul.f32 %v3055_v29, %v3050_v26  ;;  %v3064_v36 = vmul.f32 %v3056_v3, %v3050_v26  ;;  %v3065_v38 = vmul.f32 %v3057_v18, %v3050_v26  ;;  %v3066_v19 = vmul.f32 %v3058_v60, %v3050_v26 }
 0x99a   :  { %v3067_v32 = vpack.c.bf16 %v3060_v63, %v3059_v25  ;;  %v3068_v43 = vpack.c.bf16 %v3062_v35, %v3061_v34  ;;  %v3247_v12 = vadd.f32 %v3246_v8, %v3245_v7 }
 0x99b   :  { %v4070_v44 = vpop.f32.mrf.mxu1  ;;  %v3069_v30 = vpack.c.bf16 %v3064_v36, %v3063_v27  ;;  %v3070_v45 = vpack.c.bf16 %v3066_v19, %v3065_v38  ;;  %v3269_v36 = vstv %s4929_s3 }
 0x99c   :  { %4087 = vmatprep.mubr.bf16.mxu0 %v3067_v32  ;;  %v3248_v16 = vrot.slane %v3247_v12, 1 }
 0x99d   :  { %4088 = vmatmul.mubr.bf16.vlgmr.msra.gmra.mxu0 %v3068_v43 }
 0x99e   :  { %4091 = vmatprep.mubr.bf16.mxu0 %v3069_v30  ;;  %v3249_v18 = vadd.f32 %v3248_v16, %v3247_v12 }
 0x9a5   :  { %4092 = vmatmul.mubr.bf16.gmra.mxu0 %v3070_v45 }
 0xa5d   :  { %v4089_v33 = vpop.f32.mrf.mxu0 }
 0xa5e   :  { %v3210_v54 = vmul.f32 %v4089_v33, %v3202_v51 }
 0xa5f   :  { %v3169_v37 = vpop.f32.mrf.mxu0 }
 0xa60   :  { %v3208_v22 = vmul.f32 %v3200_v47, %v3169_v37 }
 0xa61   :  { %v4090_v48 = vpop.f32.mrf.mxu0 }
 0xa62   :  { %v3211_v56 = vmul.f32 %v4090_v48, %v3203_v52 }
 0xa63   :  { %v3172_v28 = vpop.f32.mrf.mxu0 }
 0xa64   :  { %v3209_v39 = vmul.f32 %v3201_v50, %v3172_v28 }
 0xa65   :  { %v4093_v53 = vpop.f32.mrf.mxu0 }
 0xa66   :  { %v3225_v21 = vadd.f32 %v3209_v39, %v3208_v22  ;;  %v3214_v61 = vmul.f32 %v4093_v53, %v3206_v49 }
 0xa67   :  { %v3185_v55 = vpop.f32.mrf.mxu0 }
 0xa68   :  { %v3226_v58 = vadd.f32 %v3225_v21, %v3210_v54  ;;  %v3212_v57 = vmul.f32 %v3204_v20, %v3185_v55 }
 0xa69   :  { %v4094_v40 = vpop.f32.mrf.mxu0 }
 0xa6a   :  { %v3227_v42 = vadd.f32 %v3226_v58, %v3211_v56  ;;  %v3215_v46 = vmul.f32 %v4094_v40, %v3207_v0 }
 0xa6b   :  { %v3188_v17 = vpop.f32.mrf.mxu0 }
 0xa6c   :  { %v3213_v59 = vmul.f32 %v3205_v41, %v3188_v17  ;;  %3228 = vadd.xlane.f32.xlu0 %v3227_v42 }
 0xa6e   :  { %v3251_v62 = vadd.f32 %v3213_v59, %v3212_v57 }
 0xa70   :  { %v3252_v23 = vadd.f32 %v3251_v62, %v3214_v61 }
 0xa72   :  { %v3253_v2 = vadd.f32 %v3252_v23, %v3215_v46 }
 0xa74   :  { %3254 = vadd.xlane.f32.xlu1 %v3253_v2 }
 0xaf5   :  { %v3229_v10 = vpop.xlane.xlu0 %3228 }
 0xaf6   :  { %v3230_v11 = vrot.slane %v3229_v10, 4 }
 0xaf8   :  { %v3231_v1 = vadd.f32 %v3230_v11, %v3229_v10 }
 0xafa   :  { %v3232_v13 = vrot.slane %v3231_v1, 2 }
 0xafc   :  { %v3233_v14 = vadd.f32 %v3232_v13, %v3231_v1 }
 0xafd   :  { %v3255_v15 = vpop.xlane.xlu1 %3254 }
 0xafe   :  { %v3256_v24 = vrot.slane %v3255_v15, 4  ;;  %v3234_v26 = vrot.slane %v3233_v14, 1 }
 0xb00   :  { %v3257_v29 = vadd.f32 %v3256_v24, %v3255_v15  ;;  %v3235_v3 = vadd.f32 %v3234_v26, %v3233_v14 }
 0xb02   :  { %v3258_v60 = vrot.slane %v3257_v29, 2  ;;  %4097 = vpush %v3235_v3 }
 0xb03   :  { %4099 = vpush %v3249_v18 }
 0xb04   :  { %v3259_v31 = vadd.f32 %v3258_v60, %v3257_v29 }
 0xb06   :  { %v3260_v25 = vrot.slane %v3259_v31, 1 }
 0xb08   :  { %v3261_v63 = vadd.f32 %v3260_v25, %v3259_v31 }
 0xb0a   :  { %4101 = vpush %v3261_v63 }
 0xb33   :  { %s4098_s0 = spop %4097 }
 0xb34   :  { %s3237_s30 = sadd.f32 %s4098_s0, %s4096_s2  ;;  %s4100_s5 = spop %4099 }
 0xb36   :  { %v3239_v34 = vstv %s3237_s30 }
 0xb37   :  { %v3240_v5 = vsel %vm3238_vm1, %v3239_v34, 0.0 }
 0xb3b   :  { %s4102_s6 = spop %4101 }
 0xb3c   :  { %s3263_s7 = sadd.f32 %s4102_s6, %s4100_s5 }
 0xb3e   :  { %v3265_v35 = vstv %s3263_s7 }
 0xb3f   :  { %v3266_v27 = vsel %vm3264_vm3, %v3265_v35, 0.0 }
 0xb40   :  { %v3267_v38 = vadd.f32 %v3266_v27, %v3240_v5 }
 0xb42   :  { %v3270_v19 = vadd.f32 %v3269_v36, %v3267_v38 }
 0xb44   :  { %v3271_v32 = vmax.f32 %v3270_v19, 0.0 }
 0xb46   :  { %3273 = vst.msk [vmem:[%s4930_s4] sm:$0x3] %vm3272_vm8, %v3271_v32 }
 0xb47   :  { %3278 = vsyncpa [#allocation4], 1 }

</bundles_post_ra>
